<compile_context>
chip_gen: v6e
topology: v6e:2x2x1
jax: 0.10.0
libtpu: 0.0.40
codegen_flags: <defaults>
</compile_context>

<pallas_src>
import math
from functools import partial

import jax
import jax.numpy as jnp
import numpy as np
from jax.experimental import pallas as pl
from jax.experimental.pallas import tpu as pltpu

NEG_INF = -1e30          # additive mask value (PyTorch uses -inf bool masks)
LN_EPS = 1e-5            # nn.LayerNorm default eps
INV_SQRT2 = 1.0 / math.sqrt(2.0)
VMEM_LIMIT = 32 * 1024 * 1024   # explicit scoped-VMEM budget; safe on v5e/v6e/v7x

# On v6e/v7x set MATMUL_DTYPE = jnp.bfloat16 for ~2x MXU throughput and half
# the VMEM/HBM bytes per tile (accumulation stays f32 via
# preferred_element_type).  Kept f32 here so the run is bit-comparable with
# the f32 pure-JAX reference at tight tolerances.
MATMUL_DTYPE = jnp.float32


# ------------------------------ in-kernel math ------------------------------

def _mm(a, b):
    """a @ b with f32 accumulation on the MXU (inputs cast to MATMUL_DTYPE)."""
    return jnp.dot(a.astype(MATMUL_DTYPE), b.astype(MATMUL_DTYPE),
                   preferred_element_type=jnp.float32)


def _mm_nt(a, b):
    """a @ b.T with f32 accumulation (contract the last dim of both)."""
    return jax.lax.dot_general(
        a.astype(MATMUL_DTYPE), b.astype(MATMUL_DTYPE),
        (((1,), (1,)), ((), ())), preferred_element_type=jnp.float32)


def _ln(x, g, b):
    mu = jnp.mean(x, axis=-1, keepdims=True)
    xc = x - mu
    var = jnp.mean(xc * xc, axis=-1, keepdims=True)          # biased (PyTorch)
    return xc * jax.lax.rsqrt(var + LN_EPS) * g + b


def _erf(z):
    # Abramowitz & Stegun 7.1.26 (max abs err ~1.5e-7; exp runs on the EUP).
    # TODO(synk): replace with lax.erf once Mosaic has a native erf lowering.
    a1, a2, a3, a4, a5 = 0.254829592, -0.284496736, 1.421413741, -1.453152027, 1.061405429
    pc = 0.3275911
    az = jnp.maximum(z, -z)
    t = 1.0 / (1.0 + pc * az)
    poly = ((((a5 * t + a4) * t + a3) * t + a2) * t + a1) * t
    e = 1.0 - poly * jnp.exp(-az * az)
    return jnp.where(z < 0.0, -e, e)


def _gelu(x):
    # nn.GELU() default (erf form)
    return 0.5 * x * (1.0 + _erf(x * INV_SQRT2))


def _mha_core(q, k, v, mask, wo, num_heads, scale):
    """Per-head attention + output projection, accumulated over heads.
    q: (Tq, D), k/v: (Tk, D) already projected; returns (ctx@Wo, mean-head P)."""
    Tq, D = q.shape
    Tk = k.shape[0]
    Dh = D // num_heads
    o = jnp.zeros((Tq, D), jnp.float32)
    aw = jnp.zeros((Tq, Tk), jnp.float32)
    for h in range(num_heads):               # small, static head count
        sl = slice(h * Dh, (h + 1) * Dh)
        s = _mm_nt(q[:, sl], k[:, sl]) * scale + mask
        s = s - jnp.max(s, axis=-1, keepdims=True)
        e = jnp.exp(s)
        p = e * pl.reciprocal(jnp.sum(e, axis=-1, keepdims=True), approx=True)
        aw = aw + p
        # ctx @ Wo decomposes per head: sum_h ctx_h @ Wo[h*Dh:(h+1)*Dh, :]
        o = o + _mm(_mm(p, v[:, sl]), wo[sl, :])
    return o, aw * (1.0 / num_heads)


# ------------------------------ Pallas kernels ------------------------------

def _self_attn_kernel(x_ref, m_ref, wqkv_ref, bqkv_ref, wo_ref, bo_ref,
                      pre_g_ref, pre_b_ref, ln_g_ref, ln_b_ref,
                      y_ref, aw_ref, *, num_heads):
    x = x_ref[...]                                        # (T, D)
    D = x.shape[-1]
    xn = _ln(x, pre_g_ref[...], pre_b_ref[...])           # pre_norm
    qkv = _mm(xn, wqkv_ref[...]) + bqkv_ref[...]          # fused QKV (T, 3D)
    q, k, v = qkv[:, :D], qkv[:, D:2 * D], qkv[:, 2 * D:]
    o, aw = _mha_core(q, k, v, m_ref[...], wo_ref[...], num_heads,
                      1.0 / math.sqrt(D // num_heads))
    y_ref[...] = _ln(xn + o + bo_ref[...], ln_g_ref[...], ln_b_ref[...])
    aw_ref[...] = aw


def _cross_attn_kernel(x_ref, enc_ref, m_ref, wq_ref, bq_ref, wkv_ref, bkv_ref,
                       wo_ref, bo_ref, ln_g_ref, ln_b_ref,
                       y_ref, aw_ref, *, num_heads):
    x = x_ref[...]                                        # (T, D)
    D = x.shape[-1]
    q = _mm(x, wq_ref[...]) + bq_ref[...]
    kv = _mm(enc_ref[...], wkv_ref[...]) + bkv_ref[...]   # fused KV (Te, 2D)
    k, v = kv[:, :D], kv[:, D:]
    o, aw = _mha_core(q, k, v, m_ref[...], wo_ref[...], num_heads,
                      1.0 / math.sqrt(D // num_heads))
    y_ref[...] = _ln(x + o + bo_ref[...], ln_g_ref[...], ln_b_ref[...])
    aw_ref[...] = aw


def _ffn_kernel(x_ref, w1_ref, b1_ref, w2_ref, b2_ref, g_ref, b_ref, y_ref):
    x = x_ref[...]                                        # (tm, D)
    h = _gelu(_mm(x, w1_ref[...]) + b1_ref[...])
    f = _mm(h, w2_ref[...]) + b2_ref[...]
    y_ref[...] = _ln(x + f, g_ref[...], b_ref[...])


def _linear_kernel(x_ref, w_ref, b_ref, o_ref, acc_ref):
    @pl.when(pl.program_id(2) == 0)
    def _init():
        acc_ref[...] = jnp.zeros_like(acc_ref)

    acc_ref[...] += _mm(x_ref[...], w_ref[...])

    @pl.when(pl.program_id(2) == pl.num_programs(2) - 1)
    def _finalize():
        o_ref[...] = acc_ref[...] + b_ref[...]


# ------------------------------ Pallas wrappers ------------------------------

def _divisor_tile(dim, max_tile, mult):
    """Largest tile <= max_tile that divides dim and is a multiple of `mult`;
    falls back to the full dimension (a full-extent block is always legal)."""
    if dim <= max_tile:
        return dim
    for t in range(max_tile, mult - 1, -1):
        if dim % t == 0 and t % mult == 0:
            return t
    return dim


def fused_self_attention(x, mask, lp, num_heads):
    """pre_norm -> self-MHA -> +residual -> layernorm1, plus mean-head weights."""
    B, T, D = x.shape
    mp = lp["mha1"]
    # pack QKV weights once per call (layout plumbing, negligible vs activations)
    wqkv = jnp.concatenate([mp["w_q"], mp["w_k"], mp["w_v"]], axis=1)     # (D,3D)
    bqkv = jnp.concatenate([mp["b_q"], mp["b_k"], mp["b_v"]]).reshape(1, 3 * D)
    y, aw = pl.pallas_call(
        partial(_self_attn_kernel, num_heads=num_heads),
        out_shape=(jax.ShapeDtypeStruct((B, T, D), jnp.float32),
                   jax.ShapeDtypeStruct((B, T, T), jnp.float32)),
        grid=(B,),
        in_specs=[
            pl.BlockSpec((None, T, D), lambda b: (b, 0, 0)),
            pl.BlockSpec((None, T, T), lambda b: (b, 0, 0)),
            pl.BlockSpec((D, 3 * D), lambda b: (0, 0)),
            pl.BlockSpec((1, 3 * D), lambda b: (0, 0)),
            pl.BlockSpec((D, D), lambda b: (0, 0)),
            pl.BlockSpec((1, D), lambda b: (0, 0)),
            pl.BlockSpec((1, D), lambda b: (0, 0)),
            pl.BlockSpec((1, D), lambda b: (0, 0)),
            pl.BlockSpec((1, D), lambda b: (0, 0)),
            pl.BlockSpec((1, D), lambda b: (0, 0)),
        ],
        out_specs=(
            pl.BlockSpec((None, T, D), lambda b: (b, 0, 0)),
            pl.BlockSpec((None, T, T), lambda b: (b, 0, 0)),
        ),
        compiler_params=pltpu.CompilerParams(
            dimension_semantics=("parallel",),
            vmem_limit_bytes=VMEM_LIMIT),
    )(x, mask, wqkv, bqkv, mp["w_o"], mp["b_o"].reshape(1, D),
      lp["ln_pre_g"].reshape(1, D), lp["ln_pre_b"].reshape(1, D),
      lp["ln1_g"].reshape(1, D), lp["ln1_b"].reshape(1, D))
    return y, aw


def fused_cross_attention(x, enc, mask, lp, num_heads):
    """cross-MHA -> +residual -> layernorm2, plus mean-head weights."""
    B, T, D = x.shape
    Te = enc.shape[1]
    mp = lp["mha2"]
    wkv = jnp.concatenate([mp["w_k"], mp["w_v"]], axis=1)                 # (D,2D)
    bkv = jnp.concatenate([mp["b_k"], mp["b_v"]]).reshape(1, 2 * D)
    y, aw = pl.pallas_call(
        partial(_cross_attn_kernel, num_heads=num_heads),
        out_shape=(jax.ShapeDtypeStruct((B, T, D), jnp.float32),
                   jax.ShapeDtypeStruct((B, T, Te), jnp.float32)),
        grid=(B,),
        in_specs=[
            pl.BlockSpec((None, T, D), lambda b: (b, 0, 0)),
            pl.BlockSpec((None, Te, D), lambda b: (b, 0, 0)),
            pl.BlockSpec((None, T, Te), lambda b: (b, 0, 0)),
            pl.BlockSpec((D, D), lambda b: (0, 0)),
            pl.BlockSpec((1, D), lambda b: (0, 0)),
            pl.BlockSpec((D, 2 * D), lambda b: (0, 0)),
            pl.BlockSpec((1, 2 * D), lambda b: (0, 0)),
            pl.BlockSpec((D, D), lambda b: (0, 0)),
            pl.BlockSpec((1, D), lambda b: (0, 0)),
            pl.BlockSpec((1, D), lambda b: (0, 0)),
            pl.BlockSpec((1, D), lambda b: (0, 0)),
        ],
        out_specs=(
            pl.BlockSpec((None, T, D), lambda b: (b, 0, 0)),
            pl.BlockSpec((None, T, Te), lambda b: (b, 0, 0)),
        ),
        compiler_params=pltpu.CompilerParams(
            dimension_semantics=("parallel",),
            vmem_limit_bytes=VMEM_LIMIT),
    )(x, enc, mask, mp["w_q"], mp["b_q"].reshape(1, D), wkv, bkv,
      mp["w_o"], mp["b_o"].reshape(1, D),
      lp["ln2_g"].reshape(1, D), lp["ln2_b"].reshape(1, D))
    return y, aw


def fused_ffn(x, lp):
    """matmul1 -> GELU -> matmul2 -> +residual -> layernorm3, tiled over rows."""
    B, T, D = x.shape
    M = B * T
    F = lp["ffn_w1"].shape[1]
    tm = _divisor_tile(M, 256, 8)
    y = pl.pallas_call(
        _ffn_kernel,
        out_shape=jax.ShapeDtypeStruct((M, D), jnp.float32),
        grid=(M // tm,),
        in_specs=[
            pl.BlockSpec((tm, D), lambda i: (i, 0)),
            pl.BlockSpec((D, F), lambda i: (0, 0)),
            pl.BlockSpec((1, F), lambda i: (0, 0)),
            pl.BlockSpec((F, D), lambda i: (0, 0)),
            pl.BlockSpec((1, D), lambda i: (0, 0)),
            pl.BlockSpec((1, D), lambda i: (0, 0)),
            pl.BlockSpec((1, D), lambda i: (0, 0)),
        ],
        out_specs=pl.BlockSpec((tm, D), lambda i: (i, 0)),
        compiler_params=pltpu.CompilerParams(
            dimension_semantics=("parallel",),
            vmem_limit_bytes=VMEM_LIMIT),
    )(x.reshape(M, D), lp["ffn_w1"], lp["ffn_b1"].reshape(1, F),
      lp["ffn_w2"], lp["ffn_b2"].reshape(1, D),
      lp["ln3_g"].reshape(1, D), lp["ln3_b"].reshape(1, D))
    return y.reshape(B, T, D)


def linear(x2d, w, b):
    """Tiled, K-accumulating matmul + bias (used for the final vocab projection)."""
    M, K = x2d.shape
    N = w.shape[1]
    tm = _divisor_tile(M, 256, 8)
    tn = _divisor_tile(N, 512, 128)
    tk = _divisor_tile(K, 512, 128)
    return pl.pallas_call(
        _linear_kernel,
        out_shape=jax.ShapeDtypeStruct((M, N), jnp.float32),
        grid=(M // tm, N // tn, K // tk),
        in_specs=[
            pl.BlockSpec((tm, tk), lambda i, j, k: (i, k)),
            pl.BlockSpec((tk, tn), lambda i, j, k: (k, j)),
            pl.BlockSpec((1, tn), lambda i, j, k: (0, j)),
        ],
        out_specs=pl.BlockSpec((tm, tn), lambda i, j, k: (i, j)),
        scratch_shapes=[pltpu.VMEM((tm, tn), jnp.float32)],
        compiler_params=pltpu.CompilerParams(
            dimension_semantics=("parallel", "parallel", "arbitrary"),
            vmem_limit_bytes=VMEM_LIMIT),
    )(x2d, w, b.reshape(1, N))


# --------------------------- model composition -----------------------------

def gelu_exact(x):
    # exact erf-form GELU (reference path only; kernels use _gelu)
    return 0.5 * x * (1.0 + jax.lax.erf(x * INV_SQRT2))


def decoder_layer(x, enc_output, self_mask, cross_mask, lp, num_heads):
    x, w_self = fused_self_attention(x, self_mask, lp, num_heads)
    if enc_output is not None:
        x, w_cross = fused_cross_attention(x, enc_output, cross_mask, lp, num_heads)
    else:
        w_cross = jnp.zeros_like(w_self)
    x = fused_ffn(x, lp)
    return x, w_self, w_cross


def build_masks(padded_targets, target_lengths, enc_output, enc_input_lengths):
    B, T = padded_targets.shape
    causal = jnp.triu(jnp.ones((T, T), dtype=bool), k=1)            # CausalMask
    if target_lengths is not None:
        pad_dec = jnp.arange(T)[None, :] >= target_lengths[:, None]  # PadMask
        masked = causal[None, :, :] | pad_dec[:, None, :]
    else:
        masked = jnp.broadcast_to(causal[None], (B, T, T))
    self_mask = jnp.where(masked, NEG_INF, 0.0).astype(jnp.float32)
    cross_mask = None
    if enc_output is not None:
        Te = enc_output.shape[1]
        pad_enc = jnp.arange(Te)[None, :] >= enc_input_lengths[:, None]
        cross_mask = jnp.where(pad_enc[:, None, :], NEG_INF, 0.0)
        cross_mask = jnp.broadcast_to(cross_mask, (B, T, Te)).astype(jnp.float32)
    return self_mask, cross_mask


def decoder_forward(params, padded_targets, target_lengths, enc_output,
                    enc_input_lengths, num_heads):
    B, T = padded_targets.shape
    D = params["embedding"].shape[1]
    self_mask, cross_mask = build_masks(padded_targets, target_lengths,
                                        enc_output, enc_input_lengths)
    # embedding gather + positional-encoding add: XLA glue fused into one op
    # (no separate Pallas round-trip for the PE add).
    x = jnp.take(params["embedding"], padded_targets, axis=0) + params["pe"][:T][None]
    atts = {}
    for i, lp in enumerate(params["layers"]):
        x, w_self, w_cross = decoder_layer(x, enc_output, self_mask, cross_mask,
                                           lp, num_heads)
        atts[f"layer{i + 1}_dec_self"] = w_self
        atts[f"layer{i + 1}_dec_cross"] = w_cross
    V = params["final_w"].shape[1]
    seq_out = linear(x.reshape(B * T, D), params["final_w"],
                     params["final_b"]).reshape(B, T, V)
    return seq_out, atts


# --------------------------- parameter creation -----------------------------

def init_params(key, num_layers, d_model, d_ff, max_len, vocab):
    keys = iter(jax.random.split(key, num_layers * 24 + 8))

    def nrm(shape, scale=0.02):
        return scale * jax.random.normal(next(keys), shape, dtype=jnp.float32)

    def mha_params():
        return dict(
            w_q=nrm((d_model, d_model)), b_q=nrm((d_model,)),
            w_k=nrm((d_model, d_model)), b_k=nrm((d_model,)),
            w_v=nrm((d_model, d_model)), b_v=nrm((d_model,)),
            w_o=nrm((d_model, d_model)), b_o=nrm((d_model,)),
        )

    layers = []
    for _ in range(num_layers):
        layers.append(dict(
            ln_pre_g=jnp.ones((d_model,), jnp.float32), ln_pre_b=jnp.zeros((d_model,), jnp.float32),
            ln1_g=jnp.ones((d_model,), jnp.float32), ln1_b=jnp.zeros((d_model,), jnp.float32),
            ln2_g=jnp.ones((d_model,), jnp.float32), ln2_b=jnp.zeros((d_model,), jnp.float32),
            ln3_g=jnp.ones((d_model,), jnp.float32), ln3_b=jnp.zeros((d_model,), jnp.float32),
            mha1=mha_params(), mha2=mha_params(),
            ffn_w1=nrm((d_model, d_ff)), ffn_b1=nrm((d_ff,)),
            ffn_w2=nrm((d_ff, d_model)), ffn_b2=nrm((d_model,)),
        ))

    # sinusoidal positional encoding (same as PyTorch PositionalEncoding)
    position = jnp.arange(max_len, dtype=jnp.float32)[:, None]
    div_term = jnp.exp(jnp.arange(0, d_model, 2, dtype=jnp.float32)
                       * (-math.log(10000.0) / d_model))
    pe = jnp.zeros((max_len, d_model), jnp.float32)
    pe = pe.at[:, 0::2].set(jnp.sin(position * div_term))
    pe = pe.at[:, 1::2].set(jnp.cos(position * div_term))

    return dict(
        embedding=nrm((vocab, d_model), scale=1.0),
        pe=pe,
        layers=layers,
        final_w=nrm((d_model, vocab)),
        final_b=nrm((vocab,)),
    )


# ------------------------------ pure-JAX reference ---------------------------

def _ref_ln(x, g, b):
    mu = jnp.mean(x, axis=-1, keepdims=True)
    var = jnp.mean((x - mu) ** 2, axis=-1, keepdims=True)
    return (x - mu) / jnp.sqrt(var + LN_EPS) * g + b


def _ref_mha(xq, xkv, p, add_mask, H):
    B, Tq, D = xq.shape
    Tk = xkv.shape[1]
    Dh = D // H
    q = (xq @ p["w_q"] + p["b_q"]).reshape(B, Tq, H, Dh).transpose(0, 2, 1, 3)
    k = (xkv @ p["w_k"] + p["b_k"]).reshape(B, Tk, H, Dh).transpose(0, 2, 1, 3)
    v = (xkv @ p["w_v"] + p["b_v"]).reshape(B, Tk, H, Dh).transpose(0, 2, 1, 3)
    s = jnp.einsum("bhqd,bhkd->bhqk", q, k) / math.sqrt(Dh) + add_mask[:, None]
    w = jax.nn.softmax(s, axis=-1)
    o = jnp.einsum("bhqk,bhkd->bhqd", w, v)
    o = o.transpose(0, 2, 1, 3).reshape(B, Tq, D) @ p["w_o"] + p["b_o"]
    return o, jnp.mean(w, axis=1)


def decoder_forward_ref(params, padded_targets, target_lengths, enc_output,
                        enc_input_lengths, num_heads):
    B, T = padded_targets.shape
    self_mask, cross_mask = build_masks(padded_targets, target_lengths,
                                        enc_output, enc_input_lengths)
    x = jnp.take(params["embedding"], padded_targets, axis=0) + params["pe"][:T][None]
    atts = {}
    for i, p in enumerate(params["layers"]):
        x = _ref_ln(x, p["ln_pre_g"], p["ln_pre_b"])
        a1, w_self = _ref_mha(x, x, p["mha1"], self_mask, num_heads)
        x = _ref_ln(x + a1, p["ln1_g"], p["ln1_b"])
        if enc_output is not None:
            a2, w_cross = _ref_mha(x, enc_output, p["mha2"], cross_mask, num_heads)
            x = _ref_ln(x + a2, p["ln2_g"], p["ln2_b"])
        else:
            w_cross = jnp.zeros_like(w_self)
        h = gelu_exact(x @ p["ffn_w1"] + p["ffn_b1"])
        x = _ref_ln(x + h @ p["ffn_w2"] + p["ffn_b2"], p["ln3_g"], p["ln3_b"])
        atts[f"layer{i + 1}_dec_self"] = w_self
        atts[f"layer{i + 1}_dec_cross"] = w_cross
    return x @ params["final_w"] + params["final_b"], atts


# ------------------------------------ main -----------------------------------

if __name__ == "__main__":
    num_layers, d_model, num_heads, d_ff = 2, 32, 2, 64
    max_len, vocab = 16, 40
    B, T, Te = 2, 8, 12

    key = jax.random.PRNGKey(0)
    kp, kt, ke = jax.random.split(key, 3)
    params = init_params(kp, num_layers, d_model, d_ff, max_len, vocab)

    padded_targets = jax.random.randint(kt, (B, T), 0, vocab, dtype=jnp.int32)
    target_lengths = jnp.array([T, 5], dtype=jnp.int32)
    enc_output = jax.random.normal(ke, (B, Te, d_model), dtype=jnp.float32)
    enc_input_lengths = jnp.array([Te, 9], dtype=jnp.int32)

    fwd = jax.jit(partial(decoder_forward, num_heads=num_heads))
    seq_out, atts = fwd(params, padded_targets, target_lengths, enc_output,
                        enc_input_lengths)
    jax.block_until_ready(seq_out)

    ref_out, ref_atts = decoder_forward_ref(params, padded_targets, target_lengths,
                                            enc_output, enc_input_lengths, num_heads)
    # slightly looser tolerance than pure-f32: softmax denominators use the EUP
    # approx reciprocal and GELU uses a 1.5e-7-accurate erf polynomial in-kernel
    np.testing.assert_allclose(np.asarray(seq_out), np.asarray(ref_out),
                               rtol=2e-3, atol=2e-3)
    for name in ref_atts:
        np.testing.assert_allclose(np.asarray(atts[name]), np.asarray(ref_atts[name]),
                                   rtol=2e-3, atol=2e-3)
    print("KERNEL_OK")
</pallas_src>

<mosaic_0001>
module attributes {stable_mosaic.version = 11 : i64} {
  func.func @_self_attn_kernel(%arg0: i32, %arg1: memref<1x8x32xf32, #tpu.memory_space<vmem>>, %arg2: memref<1x8x8xf32, #tpu.memory_space<vmem>>, %arg3: memref<32x96xf32, #tpu.memory_space<vmem>>, %arg4: memref<1x96xf32, #tpu.memory_space<vmem>>, %arg5: memref<32x32xf32, #tpu.memory_space<vmem>>, %arg6: memref<1x32xf32, #tpu.memory_space<vmem>>, %arg7: memref<1x32xf32, #tpu.memory_space<vmem>>, %arg8: memref<1x32xf32, #tpu.memory_space<vmem>>, %arg9: memref<1x32xf32, #tpu.memory_space<vmem>>, %arg10: memref<1x32xf32, #tpu.memory_space<vmem>>, %arg11: memref<1x8x32xf32, #tpu.memory_space<vmem>>, %arg12: memref<1x8x8xf32, #tpu.memory_space<vmem>>) attributes {dimension_semantics = [#tpu.dimension_semantics<parallel>], iteration_bounds = array<i64: 2>, scalar_prefetch = 0 : i64, scratch_operands = 0 : i64, tpu.core_type = #tpu.core_type<tc>, window_params = [{transform_indices = @transform_0, window_bounds = array<i64: 1, 8, 32>}, {transform_indices = @transform_1, window_bounds = array<i64: 1, 8, 8>}, {pipeline_mode = #tpu.pipeline_mode<synchronous>, transform_indices = @transform_2, window_bounds = array<i64: 32, 96>}, {pipeline_mode = #tpu.pipeline_mode<synchronous>, transform_indices = @transform_3, window_bounds = array<i64: 1, 96>}, {pipeline_mode = #tpu.pipeline_mode<synchronous>, transform_indices = @transform_4, window_bounds = array<i64: 32, 32>}, {pipeline_mode = #tpu.pipeline_mode<synchronous>, transform_indices = @transform_5, window_bounds = array<i64: 1, 32>}, {pipeline_mode = #tpu.pipeline_mode<synchronous>, transform_indices = @transform_6, window_bounds = array<i64: 1, 32>}, {pipeline_mode = #tpu.pipeline_mode<synchronous>, transform_indices = @transform_7, window_bounds = array<i64: 1, 32>}, {pipeline_mode = #tpu.pipeline_mode<synchronous>, transform_indices = @transform_8, window_bounds = array<i64: 1, 32>}, {pipeline_mode = #tpu.pipeline_mode<synchronous>, transform_indices = @transform_9, window_bounds = array<i64: 1, 32>}, {transform_indices = @transform_10, window_bounds = array<i64: 1, 8, 32>}, {transform_indices = @transform_11, window_bounds = array<i64: 1, 8, 8>}]} {
    %c0 = arith.constant 0 : index
    %c0_0 = arith.constant 0 : index
    %c0_1 = arith.constant 0 : index
    %0 = vector.load %arg1[%c0, %c0_0, %c0_1] : memref<1x8x32xf32, #tpu.memory_space<vmem>>, vector<1x8x32xf32>
    %1 = vector.shape_cast %0 : vector<1x8x32xf32> to vector<8x32xf32>
    %c0_2 = arith.constant 0 : index
    %c0_3 = arith.constant 0 : index
    %2 = vector.load %arg7[%c0_2, %c0_3] : memref<1x32xf32, #tpu.memory_space<vmem>>, vector<1x32xf32>
    %c0_4 = arith.constant 0 : index
    %c0_5 = arith.constant 0 : index
    %3 = vector.load %arg8[%c0_4, %c0_5] : memref<1x32xf32, #tpu.memory_space<vmem>>, vector<1x32xf32>
    %cst = arith.constant dense<0.000000e+00> : vector<8xf32>
    %4 = vector.multi_reduction <add>, %1, %cst [1] : vector<8x32xf32> to vector<8xf32>
    %5 = vector.shape_cast %4 : vector<8xf32> to vector<8x1xf32>
    %cst_6 = arith.constant 3.200000e+01 : f32
    %6 = vector.broadcast %cst_6 : f32 to vector<8x1xf32>
    %7 = arith.divf %5, %6 : vector<8x1xf32>
    %8 = vector.broadcast %7 : vector<8x1xf32> to vector<8x32xf32>
    %9 = arith.subf %1, %8 : vector<8x32xf32>
    %10 = arith.mulf %9, %9 : vector<8x32xf32>
    %cst_7 = arith.constant dense<0.000000e+00> : vector<8xf32>
    %11 = vector.multi_reduction <add>, %10, %cst_7 [1] : vector<8x32xf32> to vector<8xf32>
    %12 = vector.shape_cast %11 : vector<8xf32> to vector<8x1xf32>
    %cst_8 = arith.constant 3.200000e+01 : f32
    %13 = vector.broadcast %cst_8 : f32 to vector<8x1xf32>
    %14 = arith.divf %12, %13 : vector<8x1xf32>
    %cst_9 = arith.constant 9.99999974E-6 : f32
    %15 = vector.broadcast %cst_9 : f32 to vector<8x1xf32>
    %16 = arith.addf %14, %15 : vector<8x1xf32>
    %17 = math.rsqrt %16 : vector<8x1xf32>
    %18 = vector.broadcast %17 : vector<8x1xf32> to vector<8x32xf32>
    %19 = arith.mulf %9, %18 : vector<8x32xf32>
    %20 = vector.broadcast %2 : vector<1x32xf32> to vector<8x32xf32>
    %21 = arith.mulf %19, %20 : vector<8x32xf32>
    %22 = vector.broadcast %3 : vector<1x32xf32> to vector<8x32xf32>
    %23 = arith.addf %21, %22 : vector<8x32xf32>
    %c0_10 = arith.constant 0 : index
    %c0_11 = arith.constant 0 : index
    %24 = vector.load %arg3[%c0_10, %c0_11] : memref<32x96xf32, #tpu.memory_space<vmem>>, vector<32x96xf32>
    %cst_12 = arith.constant dense<0.000000e+00> : vector<8x96xf32>
    %25 = tpu.matmul %23, %24, %cst_12 {dimension_numbers = #tpu.dot_dimension_numbers<[1], [0], [0], [1], [0, 0, 1, 1], [], []>} : vector<8x32xf32>, vector<32x96xf32>, vector<8x96xf32> -> vector<8x96xf32>
    %c0_13 = arith.constant 0 : index
    %c0_14 = arith.constant 0 : index
    %26 = vector.load %arg4[%c0_13, %c0_14] : memref<1x96xf32, #tpu.memory_space<vmem>>, vector<1x96xf32>
    %27 = vector.broadcast %26 : vector<1x96xf32> to vector<8x96xf32>
    %28 = arith.addf %25, %27 : vector<8x96xf32>
    %29 = vector.extract_strided_slice %28 {offsets = [0, 0], sizes = [8, 32], strides = [1, 1]} : vector<8x96xf32> to vector<8x32xf32>
    %30 = vector.extract_strided_slice %28 {offsets = [0, 32], sizes = [8, 32], strides = [1, 1]} : vector<8x96xf32> to vector<8x32xf32>
    %31 = vector.extract_strided_slice %28 {offsets = [0, 64], sizes = [8, 32], strides = [1, 1]} : vector<8x96xf32> to vector<8x32xf32>
    %c0_15 = arith.constant 0 : index
    %c0_16 = arith.constant 0 : index
    %c0_17 = arith.constant 0 : index
    %32 = vector.load %arg2[%c0_15, %c0_16, %c0_17] : memref<1x8x8xf32, #tpu.memory_space<vmem>>, vector<1x8x8xf32>
    %33 = vector.shape_cast %32 : vector<1x8x8xf32> to vector<8x8xf32>
    %c0_18 = arith.constant 0 : index
    %c0_19 = arith.constant 0 : index
    %34 = vector.load %arg5[%c0_18, %c0_19] : memref<32x32xf32, #tpu.memory_space<vmem>>, vector<32x32xf32>
    %cst_20 = arith.constant 0.000000e+00 : f32
    %35 = vector.broadcast %cst_20 : f32 to vector<8x32xf32>
    %cst_21 = arith.constant 0.000000e+00 : f32
    %36 = vector.broadcast %cst_21 : f32 to vector<8x8xf32>
    %37 = vector.extract_strided_slice %29 {offsets = [0, 0], sizes = [8, 16], strides = [1, 1]} : vector<8x32xf32> to vector<8x16xf32>
    %38 = vector.extract_strided_slice %30 {offsets = [0, 0], sizes = [8, 16], strides = [1, 1]} : vector<8x32xf32> to vector<8x16xf32>
    %cst_22 = arith.constant dense<0.000000e+00> : vector<8x8xf32>
    %39 = tpu.matmul %37, %38, %cst_22 {dimension_numbers = #tpu.dot_dimension_numbers<[1], [1], [0], [0], [0, 0, 1, 0], [], []>} : vector<8x16xf32>, vector<8x16xf32>, vector<8x8xf32> -> vector<8x8xf32>
    %cst_23 = arith.constant 2.500000e-01 : f32
    %40 = vector.broadcast %cst_23 : f32 to vector<8x8xf32>
    %41 = arith.mulf %39, %40 : vector<8x8xf32>
    %42 = arith.addf %41, %33 : vector<8x8xf32>
    %cst_24 = arith.constant dense<0xFF800000> : vector<8xf32>
    %43 = vector.multi_reduction <maximumf>, %42, %cst_24 [1] : vector<8x8xf32> to vector<8xf32>
    %44 = vector.shape_cast %43 : vector<8xf32> to vector<8x1xf32>
    %45 = vector.broadcast %44 : vector<8x1xf32> to vector<8x8xf32>
    %46 = arith.subf %42, %45 : vector<8x8xf32>
    %47 = math.exp %46 : vector<8x8xf32>
    %cst_25 = arith.constant dense<0.000000e+00> : vector<8xf32>
    %48 = vector.multi_reduction <add>, %47, %cst_25 [1] : vector<8x8xf32> to vector<8xf32>
    %49 = vector.shape_cast %48 : vector<8xf32> to vector<8x1xf32>
    %50 = tpu.reciprocal %49 {approx = true} : vector<8x1xf32> -> vector<8x1xf32>
    %51 = vector.broadcast %50 : vector<8x1xf32> to vector<8x8xf32>
    %52 = arith.mulf %47, %51 : vector<8x8xf32>
    %53 = arith.addf %36, %52 : vector<8x8xf32>
    %54 = vector.extract_strided_slice %31 {offsets = [0, 0], sizes = [8, 16], strides = [1, 1]} : vector<8x32xf32> to vector<8x16xf32>
    %cst_26 = arith.constant dense<0.000000e+00> : vector<8x16xf32>
    %55 = tpu.matmul %52, %54, %cst_26 {dimension_numbers = #tpu.dot_dimension_numbers<[1], [0], [0], [1], [0, 0, 1, 1], [], []>} : vector<8x8xf32>, vector<8x16xf32>, vector<8x16xf32> -> vector<8x16xf32>
    %56 = vector.extract_strided_slice %34 {offsets = [0, 0], sizes = [16, 32], strides = [1, 1]} : vector<32x32xf32> to vector<16x32xf32>
    %cst_27 = arith.constant dense<0.000000e+00> : vector<8x32xf32>
    %57 = tpu.matmul %55, %56, %cst_27 {dimension_numbers = #tpu.dot_dimension_numbers<[1], [0], [0], [1], [0, 0, 1, 1], [], []>} : vector<8x16xf32>, vector<16x32xf32>, vector<8x32xf32> -> vector<8x32xf32>
    %58 = arith.addf %35, %57 : vector<8x32xf32>
    %59 = vector.extract_strided_slice %29 {offsets = [0, 16], sizes = [8, 16], strides = [1, 1]} : vector<8x32xf32> to vector<8x16xf32>
    %60 = vector.extract_strided_slice %30 {offsets = [0, 16], sizes = [8, 16], strides = [1, 1]} : vector<8x32xf32> to vector<8x16xf32>
    %cst_28 = arith.constant dense<0.000000e+00> : vector<8x8xf32>
    %61 = tpu.matmul %59, %60, %cst_28 {dimension_numbers = #tpu.dot_dimension_numbers<[1], [1], [0], [0], [0, 0, 1, 0], [], []>} : vector<8x16xf32>, vector<8x16xf32>, vector<8x8xf32> -> vector<8x8xf32>
    %cst_29 = arith.constant 2.500000e-01 : f32
    %62 = vector.broadcast %cst_29 : f32 to vector<8x8xf32>
    %63 = arith.mulf %61, %62 : vector<8x8xf32>
    %64 = arith.addf %63, %33 : vector<8x8xf32>
    %cst_30 = arith.constant dense<0xFF800000> : vector<8xf32>
    %65 = vector.multi_reduction <maximumf>, %64, %cst_30 [1] : vector<8x8xf32> to vector<8xf32>
    %66 = vector.shape_cast %65 : vector<8xf32> to vector<8x1xf32>
    %67 = vector.broadcast %66 : vector<8x1xf32> to vector<8x8xf32>
    %68 = arith.subf %64, %67 : vector<8x8xf32>
    %69 = math.exp %68 : vector<8x8xf32>
    %cst_31 = arith.constant dense<0.000000e+00> : vector<8xf32>
    %70 = vector.multi_reduction <add>, %69, %cst_31 [1] : vector<8x8xf32> to vector<8xf32>
    %71 = vector.shape_cast %70 : vector<8xf32> to vector<8x1xf32>
    %72 = tpu.reciprocal %71 {approx = true} : vector<8x1xf32> -> vector<8x1xf32>
    %73 = vector.broadcast %72 : vector<8x1xf32> to vector<8x8xf32>
    %74 = arith.mulf %69, %73 : vector<8x8xf32>
    %75 = arith.addf %53, %74 : vector<8x8xf32>
    %76 = vector.extract_strided_slice %31 {offsets = [0, 16], sizes = [8, 16], strides = [1, 1]} : vector<8x32xf32> to vector<8x16xf32>
    %cst_32 = arith.constant dense<0.000000e+00> : vector<8x16xf32>
    %77 = tpu.matmul %74, %76, %cst_32 {dimension_numbers = #tpu.dot_dimension_numbers<[1], [0], [0], [1], [0, 0, 1, 1], [], []>} : vector<8x8xf32>, vector<8x16xf32>, vector<8x16xf32> -> vector<8x16xf32>
    %78 = vector.extract_strided_slice %34 {offsets = [16, 0], sizes = [16, 32], strides = [1, 1]} : vector<32x32xf32> to vector<16x32xf32>
    %cst_33 = arith.constant dense<0.000000e+00> : vector<8x32xf32>
    %79 = tpu.matmul %77, %78, %cst_33 {dimension_numbers = #tpu.dot_dimension_numbers<[1], [0], [0], [1], [0, 0, 1, 1], [], []>} : vector<8x16xf32>, vector<16x32xf32>, vector<8x32xf32> -> vector<8x32xf32>
    %80 = arith.addf %58, %79 : vector<8x32xf32>
    %cst_34 = arith.constant 5.000000e-01 : f32
    %81 = vector.broadcast %cst_34 : f32 to vector<8x8xf32>
    %82 = arith.mulf %75, %81 : vector<8x8xf32>
    %83 = arith.addf %23, %80 : vector<8x32xf32>
    %c0_35 = arith.constant 0 : index
    %c0_36 = arith.constant 0 : index
    %84 = vector.load %arg6[%c0_35, %c0_36] : memref<1x32xf32, #tpu.memory_space<vmem>>, vector<1x32xf32>
    %85 = vector.broadcast %84 : vector<1x32xf32> to vector<8x32xf32>
    %86 = arith.addf %83, %85 : vector<8x32xf32>
    %c0_37 = arith.constant 0 : index
    %c0_38 = arith.constant 0 : index
    %87 = vector.load %arg9[%c0_37, %c0_38] : memref<1x32xf32, #tpu.memory_space<vmem>>, vector<1x32xf32>
    %c0_39 = arith.constant 0 : index
    %c0_40 = arith.constant 0 : index
    %88 = vector.load %arg10[%c0_39, %c0_40] : memref<1x32xf32, #tpu.memory_space<vmem>>, vector<1x32xf32>
    %cst_41 = arith.constant dense<0.000000e+00> : vector<8xf32>
    %89 = vector.multi_reduction <add>, %86, %cst_41 [1] : vector<8x32xf32> to vector<8xf32>
    %90 = vector.shape_cast %89 : vector<8xf32> to vector<8x1xf32>
    %cst_42 = arith.constant 3.200000e+01 : f32
    %91 = vector.broadcast %cst_42 : f32 to vector<8x1xf32>
    %92 = arith.divf %90, %91 : vector<8x1xf32>
    %93 = vector.broadcast %92 : vector<8x1xf32> to vector<8x32xf32>
    %94 = arith.subf %86, %93 : vector<8x32xf32>
    %95 = arith.mulf %94, %94 : vector<8x32xf32>
    %cst_43 = arith.constant dense<0.000000e+00> : vector<8xf32>
    %96 = vector.multi_reduction <add>, %95, %cst_43 [1] : vector<8x32xf32> to vector<8xf32>
    %97 = vector.shape_cast %96 : vector<8xf32> to vector<8x1xf32>
    %cst_44 = arith.constant 3.200000e+01 : f32
    %98 = vector.broadcast %cst_44 : f32 to vector<8x1xf32>
    %99 = arith.divf %97, %98 : vector<8x1xf32>
    %cst_45 = arith.constant 9.99999974E-6 : f32
    %100 = vector.broadcast %cst_45 : f32 to vector<8x1xf32>
    %101 = arith.addf %99, %100 : vector<8x1xf32>
    %102 = math.rsqrt %101 : vector<8x1xf32>
    %103 = vector.broadcast %102 : vector<8x1xf32> to vector<8x32xf32>
    %104 = arith.mulf %94, %103 : vector<8x32xf32>
    %105 = vector.broadcast %87 : vector<1x32xf32> to vector<8x32xf32>
    %106 = arith.mulf %104, %105 : vector<8x32xf32>
    %107 = vector.broadcast %88 : vector<1x32xf32> to vector<8x32xf32>
    %108 = arith.addf %106, %107 : vector<8x32xf32>
    %c0_46 = arith.constant 0 : index
    %c0_47 = arith.constant 0 : index
    %c0_48 = arith.constant 0 : index
    %109 = vector.load %arg11[%c0_46, %c0_47, %c0_48] : memref<1x8x32xf32, #tpu.memory_space<vmem>>, vector<1x8x32xf32>
    %110 = vector.shape_cast %109 : vector<1x8x32xf32> to vector<8x32xf32>
    %111 = vector.shape_cast %108 : vector<8x32xf32> to vector<1x8x32xf32>
    tpu.vector_store %arg11[%c0_46, %c0_47, %c0_48], %111 {strides = array<i32>} : memref<1x8x32xf32, #tpu.memory_space<vmem>>, vector<1x8x32xf32>,
    %c0_49 = arith.constant 0 : index
    %c0_50 = arith.constant 0 : index
    %c0_51 = arith.constant 0 : index
    %112 = vector.load %arg12[%c0_49, %c0_50, %c0_51] : memref<1x8x8xf32, #tpu.memory_space<vmem>>, vector<1x8x8xf32>
    %113 = vector.shape_cast %112 : vector<1x8x8xf32> to vector<8x8xf32>
    %114 = vector.shape_cast %82 : vector<8x8xf32> to vector<1x8x8xf32>
    tpu.vector_store %arg12[%c0_49, %c0_50, %c0_51], %114 {strides = array<i32>} : memref<1x8x8xf32, #tpu.memory_space<vmem>>, vector<1x8x8xf32>,
    return
  }
  func.func @transform_0(%arg0: i32) -> (i32, i32, i32) {
    %c0_i32 = arith.constant 0 : i32
    %c0_i32_0 = arith.constant 0 : i32
    %c0_i32_1 = arith.constant 0 : i32
    return %arg0, %c0_i32, %c0_i32_0 : i32, i32, i32
  }
  func.func @transform_1(%arg0: i32) -> (i32, i32, i32) {
    %c0_i32 = arith.constant 0 : i32
    %c0_i32_0 = arith.constant 0 : i32
    %c0_i32_1 = arith.constant 0 : i32
    return %arg0, %c0_i32, %c0_i32_0 : i32, i32, i32
  }
  func.func @transform_2(%arg0: i32) -> (i32, i32) {
    %c0_i32 = arith.constant 0 : i32
    %c0_i32_0 = arith.constant 0 : i32
    %c0_i32_1 = arith.constant 0 : i32
    return %c0_i32, %c0_i32_0 : i32, i32
  }
  func.func @transform_3(%arg0: i32) -> (i32, i32) {
    %c0_i32 = arith.constant 0 : i32
    %c0_i32_0 = arith.constant 0 : i32
    %c0_i32_1 = arith.constant 0 : i32
    return %c0_i32, %c0_i32_0 : i32, i32
  }
  func.func @transform_4(%arg0: i32) -> (i32, i32) {
    %c0_i32 = arith.constant 0 : i32
    %c0_i32_0 = arith.constant 0 : i32
    %c0_i32_1 = arith.constant 0 : i32
    return %c0_i32, %c0_i32_0 : i32, i32
  }
  func.func @transform_5(%arg0: i32) -> (i32, i32) {
    %c0_i32 = arith.constant 0 : i32
    %c0_i32_0 = arith.constant 0 : i32
    %c0_i32_1 = arith.constant 0 : i32
    return %c0_i32, %c0_i32_0 : i32, i32
  }
  func.func @transform_6(%arg0: i32) -> (i32, i32) {
    %c0_i32 = arith.constant 0 : i32
    %c0_i32_0 = arith.constant 0 : i32
    %c0_i32_1 = arith.constant 0 : i32
    return %c0_i32, %c0_i32_0 : i32, i32
  }
  func.func @transform_7(%arg0: i32) -> (i32, i32) {
    %c0_i32 = arith.constant 0 : i32
    %c0_i32_0 = arith.constant 0 : i32
    %c0_i32_1 = arith.constant 0 : i32
    return %c0_i32, %c0_i32_0 : i32, i32
  }
  func.func @transform_8(%arg0: i32) -> (i32, i32) {
    %c0_i32 = arith.constant 0 : i32
    %c0_i32_0 = arith.constant 0 : i32
    %c0_i32_1 = arith.constant 0 : i32
    return %c0_i32, %c0_i32_0 : i32, i32
  }
  func.func @transform_9(%arg0: i32) -> (i32, i32) {
    %c0_i32 = arith.constant 0 : i32
    %c0_i32_0 = arith.constant 0 : i32
    %c0_i32_1 = arith.constant 0 : i32
    return %c0_i32, %c0_i32_0 : i32, i32
  }
  func.func @transform_10(%arg0: i32) -> (i32, i32, i32) {
    %c0_i32 = arith.constant 0 : i32
    %c0_i32_0 = arith.constant 0 : i32
    %c0_i32_1 = arith.constant 0 : i32
    return %arg0, %c0_i32, %c0_i32_0 : i32, i32, i32
  }
  func.func @transform_11(%arg0: i32) -> (i32, i32, i32) {
    %c0_i32 = arith.constant 0 : i32
    %c0_i32_0 = arith.constant 0 : i32
    %c0_i32_1 = arith.constant 0 : i32
    return %arg0, %c0_i32, %c0_i32_0 : i32, i32, i32
  }
}

module attributes {stable_mosaic.version = 11 : i64} {
  func.func @_ffn_kernel(%arg0: i32, %arg1: memref<16x32xf32, #tpu.memory_space<vmem>>, %arg2: memref<32x64xf32, #tpu.memory_space<vmem>>, %arg3: memref<1x64xf32, #tpu.memory_space<vmem>>, %arg4: memref<64x32xf32, #tpu.memory_space<vmem>>, %arg5: memref<1x32xf32, #tpu.memory_space<vmem>>, %arg6: memref<1x32xf32, #tpu.memory_space<vmem>>, %arg7: memref<1x32xf32, #tpu.memory_space<vmem>>, %arg8: memref<16x32xf32, #tpu.memory_space<vmem>>) attributes {dimension_semantics = [#tpu.dimension_semantics<parallel>], iteration_bounds = array<i64: 1>, scalar_prefetch = 0 : i64, scratch_operands = 0 : i64, tpu.core_type = #tpu.core_type<tc>, window_params = [{transform_indices = @transform_0, window_bounds = array<i64: 16, 32>}, {pipeline_mode = #tpu.pipeline_mode<synchronous>, transform_indices = @transform_1, window_bounds = array<i64: 32, 64>}, {pipeline_mode = #tpu.pipeline_mode<synchronous>, transform_indices = @transform_2, window_bounds = array<i64: 1, 64>}, {pipeline_mode = #tpu.pipeline_mode<synchronous>, transform_indices = @transform_3, window_bounds = array<i64: 64, 32>}, {pipeline_mode = #tpu.pipeline_mode<synchronous>, transform_indices = @transform_4, window_bounds = array<i64: 1, 32>}, {pipeline_mode = #tpu.pipeline_mode<synchronous>, transform_indices = @transform_5, window_bounds = array<i64: 1, 32>}, {pipeline_mode = #tpu.pipeline_mode<synchronous>, transform_indices = @transform_6, window_bounds = array<i64: 1, 32>}, {transform_indices = @transform_7, window_bounds = array<i64: 16, 32>}]} {
    %c0 = arith.constant 0 : index
    %c0_0 = arith.constant 0 : index
    %0 = vector.load %arg1[%c0, %c0_0] : memref<16x32xf32, #tpu.memory_space<vmem>>, vector<16x32xf32>
    %c0_1 = arith.constant 0 : index
    %c0_2 = arith.constant 0 : index
    %1 = vector.load %arg2[%c0_1, %c0_2] : memref<32x64xf32, #tpu.memory_space<vmem>>, vector<32x64xf32>
    %cst = arith.constant dense<0.000000e+00> : vector<16x64xf32>
    %2 = tpu.matmul %0, %1, %cst {dimension_numbers = #tpu.dot_dimension_numbers<[1], [0], [0], [1], [0, 0, 1, 1], [], []>} : vector<16x32xf32>, vector<32x64xf32>, vector<16x64xf32> -> vector<16x64xf32>
    %c0_3 = arith.constant 0 : index
    %c0_4 = arith.constant 0 : index
    %3 = vector.load %arg3[%c0_3, %c0_4] : memref<1x64xf32, #tpu.memory_space<vmem>>, vector<1x64xf32>
    %4 = vector.broadcast %3 : vector<1x64xf32> to vector<16x64xf32>
    %5 = arith.addf %2, %4 : vector<16x64xf32>
    %cst_5 = arith.constant 5.000000e-01 : f32
    %6 = vector.broadcast %cst_5 : f32 to vector<16x64xf32>
    %7 = arith.mulf %6, %5 : vector<16x64xf32>
    %cst_6 = arith.constant 0.707106769 : f32
    %8 = vector.broadcast %cst_6 : f32 to vector<16x64xf32>
    %9 = arith.mulf %5, %8 : vector<16x64xf32>
    %cst_7 = arith.constant 0.000000e+00 : f32
    %10 = vector.broadcast %cst_7 : f32 to vector<16x64xf32>
    %11 = arith.subf %10, %9 : vector<16x64xf32>
    %12 = arith.maximumf %9, %11 : vector<16x64xf32>
    %cst_8 = arith.constant 0.327591091 : f32
    %13 = vector.broadcast %cst_8 : f32 to vector<16x64xf32>
    %14 = arith.mulf %13, %12 : vector<16x64xf32>
    %cst_9 = arith.constant 1.000000e+00 : f32
    %15 = vector.broadcast %cst_9 : f32 to vector<16x64xf32>
    %16 = arith.addf %15, %14 : vector<16x64xf32>
    %cst_10 = arith.constant 1.000000e+00 : f32
    %17 = vector.broadcast %cst_10 : f32 to vector<16x64xf32>
    %18 = arith.divf %17, %16 : vector<16x64xf32>
    %cst_11 = arith.constant 1.06140542 : f32
    %19 = vector.broadcast %cst_11 : f32 to vector<16x64xf32>
    %20 = arith.mulf %19, %18 : vector<16x64xf32>
    %cst_12 = arith.constant -1.45315206 : f32
    %21 = vector.broadcast %cst_12 : f32 to vector<16x64xf32>
    %22 = arith.addf %20, %21 : vector<16x64xf32>
    %23 = arith.mulf %22, %18 : vector<16x64xf32>
    %cst_13 = arith.constant 1.42141378 : f32
    %24 = vector.broadcast %cst_13 : f32 to vector<16x64xf32>
    %25 = arith.addf %23, %24 : vector<16x64xf32>
    %26 = arith.mulf %25, %18 : vector<16x64xf32>
    %cst_14 = arith.constant -0.284496725 : f32
    %27 = vector.broadcast %cst_14 : f32 to vector<16x64xf32>
    %28 = arith.addf %26, %27 : vector<16x64xf32>
    %29 = arith.mulf %28, %18 : vector<16x64xf32>
    %cst_15 = arith.constant 0.254829586 : f32
    %30 = vector.broadcast %cst_15 : f32 to vector<16x64xf32>
    %31 = arith.addf %29, %30 : vector<16x64xf32>
    %32 = arith.mulf %31, %18 : vector<16x64xf32>
    %cst_16 = arith.constant 0.000000e+00 : f32
    %33 = vector.broadcast %cst_16 : f32 to vector<16x64xf32>
    %34 = arith.subf %33, %12 : vector<16x64xf32>
    %35 = arith.mulf %34, %12 : vector<16x64xf32>
    %36 = math.exp %35 : vector<16x64xf32>
    %37 = arith.mulf %32, %36 : vector<16x64xf32>
    %cst_17 = arith.constant 1.000000e+00 : f32
    %38 = vector.broadcast %cst_17 : f32 to vector<16x64xf32>
    %39 = arith.subf %38, %37 : vector<16x64xf32>
    %cst_18 = arith.constant 0.000000e+00 : f32
    %40 = vector.broadcast %cst_18 : f32 to vector<16x64xf32>
    %41 = arith.cmpf olt, %9, %40 : vector<16x64xf32>
    %cst_19 = arith.constant 0.000000e+00 : f32
    %42 = vector.broadcast %cst_19 : f32 to vector<16x64xf32>
    %43 = arith.subf %42, %39 : vector<16x64xf32>
    %44 = arith.select %41, %43, %39 : vector<16x64xi1>, vector<16x64xf32>
    %cst_20 = arith.constant 1.000000e+00 : f32
    %45 = vector.broadcast %cst_20 : f32 to vector<16x64xf32>
    %46 = arith.addf %45, %44 : vector<16x64xf32>
    %47 = arith.mulf %7, %46 : vector<16x64xf32>
    %c0_21 = arith.constant 0 : index
    %c0_22 = arith.constant 0 : index
    %48 = vector.load %arg4[%c0_21, %c0_22] : memref<64x32xf32, #tpu.memory_space<vmem>>, vector<64x32xf32>
    %cst_23 = arith.constant dense<0.000000e+00> : vector<16x32xf32>
    %49 = tpu.matmul %47, %48, %cst_23 {dimension_numbers = #tpu.dot_dimension_numbers<[1], [0], [0], [1], [0, 0, 1, 1], [], []>} : vector<16x64xf32>, vector<64x32xf32>, vector<16x32xf32> -> vector<16x32xf32>
    %c0_24 = arith.constant 0 : index
    %c0_25 = arith.constant 0 : index
    %50 = vector.load %arg5[%c0_24, %c0_25] : memref<1x32xf32, #tpu.memory_space<vmem>>, vector<1x32xf32>
    %51 = vector.broadcast %50 : vector<1x32xf32> to vector<16x32xf32>
    %52 = arith.addf %49, %51 : vector<16x32xf32>
    %53 = arith.addf %0, %52 : vector<16x32xf32>
    %c0_26 = arith.constant 0 : index
    %c0_27 = arith.constant 0 : index
    %54 = vector.load %arg6[%c0_26, %c0_27] : memref<1x32xf32, #tpu.memory_space<vmem>>, vector<1x32xf32>
    %c0_28 = arith.constant 0 : index
    %c0_29 = arith.constant 0 : index
    %55 = vector.load %arg7[%c0_28, %c0_29] : memref<1x32xf32, #tpu.memory_space<vmem>>, vector<1x32xf32>
    %cst_30 = arith.constant dense<0.000000e+00> : vector<16xf32>
    %56 = vector.multi_reduction <add>, %53, %cst_30 [1] : vector<16x32xf32> to vector<16xf32>
    %57 = vector.shape_cast %56 : vector<16xf32> to vector<16x1xf32>
    %cst_31 = arith.constant 3.200000e+01 : f32
    %58 = vector.broadcast %cst_31 : f32 to vector<16x1xf32>
    %59 = arith.divf %57, %58 : vector<16x1xf32>
    %60 = vector.broadcast %59 : vector<16x1xf32> to vector<16x32xf32>
    %61 = arith.subf %53, %60 : vector<16x32xf32>
    %62 = arith.mulf %61, %61 : vector<16x32xf32>
    %cst_32 = arith.constant dense<0.000000e+00> : vector<16xf32>
    %63 = vector.multi_reduction <add>, %62, %cst_32 [1] : vector<16x32xf32> to vector<16xf32>
    %64 = vector.shape_cast %63 : vector<16xf32> to vector<16x1xf32>
    %cst_33 = arith.constant 3.200000e+01 : f32
    %65 = vector.broadcast %cst_33 : f32 to vector<16x1xf32>
    %66 = arith.divf %64, %65 : vector<16x1xf32>
    %cst_34 = arith.constant 9.99999974E-6 : f32
    %67 = vector.broadcast %cst_34 : f32 to vector<16x1xf32>
    %68 = arith.addf %66, %67 : vector<16x1xf32>
    %69 = math.rsqrt %68 : vector<16x1xf32>
    %70 = vector.broadcast %69 : vector<16x1xf32> to vector<16x32xf32>
    %71 = arith.mulf %61, %70 : vector<16x32xf32>
    %72 = vector.broadcast %54 : vector<1x32xf32> to vector<16x32xf32>
    %73 = arith.mulf %71, %72 : vector<16x32xf32>
    %74 = vector.broadcast %55 : vector<1x32xf32> to vector<16x32xf32>
    %75 = arith.addf %73, %74 : vector<16x32xf32>
    %c0_35 = arith.constant 0 : index
    %c0_36 = arith.constant 0 : index
    %76 = vector.load %arg8[%c0_35, %c0_36] : memref<16x32xf32, #tpu.memory_space<vmem>>, vector<16x32xf32>
    tpu.vector_store %arg8[%c0_35, %c0_36], %75 {strides = array<i32>} : memref<16x32xf32, #tpu.memory_space<vmem>>, vector<16x32xf32>,
    return
  }
  func.func @transform_0(%arg0: i32) -> (i32, i32) {
    %c0_i32 = arith.constant 0 : i32
    %c0_i32_0 = arith.constant 0 : i32
    return %arg0, %c0_i32 : i32, i32
  }
  func.func @transform_1(%arg0: i32) -> (i32, i32) {
    %c0_i32 = arith.constant 0 : i32
    %c0_i32_0 = arith.constant 0 : i32
    %c0_i32_1 = arith.constant 0 : i32
    return %c0_i32, %c0_i32_0 : i32, i32
  }
  func.func @transform_2(%arg0: i32) -> (i32, i32) {
    %c0_i32 = arith.constant 0 : i32
    %c0_i32_0 = arith.constant 0 : i32
    %c0_i32_1 = arith.constant 0 : i32
    return %c0_i32, %c0_i32_0 : i32, i32
  }
  func.func @transform_3(%arg0: i32) -> (i32, i32) {
    %c0_i32 = arith.constant 0 : i32
    %c0_i32_0 = arith.constant 0 : i32
    %c0_i32_1 = arith.constant 0 : i32
    return %c0_i32, %c0_i32_0 : i32, i32
  }
  func.func @transform_4(%arg0: i32) -> (i32, i32) {
    %c0_i32 = arith.constant 0 : i32
    %c0_i32_0 = arith.constant 0 : i32
    %c0_i32_1 = arith.constant 0 : i32
    return %c0_i32, %c0_i32_0 : i32, i32
  }
  func.func @transform_5(%arg0: i32) -> (i32, i32) {
    %c0_i32 = arith.constant 0 : i32
    %c0_i32_0 = arith.constant 0 : i32
    %c0_i32_1 = arith.constant 0 : i32
    return %c0_i32, %c0_i32_0 : i32, i32
  }
  func.func @transform_6(%arg0: i32) -> (i32, i32) {
    %c0_i32 = arith.constant 0 : i32
    %c0_i32_0 = arith.constant 0 : i32
    %c0_i32_1 = arith.constant 0 : i32
    return %c0_i32, %c0_i32_0 : i32, i32
  }
  func.func @transform_7(%arg0: i32) -> (i32, i32) {
    %c0_i32 = arith.constant 0 : i32
    %c0_i32_0 = arith.constant 0 : i32
    return %arg0, %c0_i32 : i32, i32
  }
}

module attributes {stable_mosaic.version = 11 : i64} {
  func.func @_cross_attn_kernel(%arg0: i32, %arg1: memref<1x8x32xf32, #tpu.memory_space<vmem>>, %arg2: memref<1x12x32xf32, #tpu.memory_space<vmem>>, %arg3: memref<1x8x12xf32, #tpu.memory_space<vmem>>, %arg4: memref<32x32xf32, #tpu.memory_space<vmem>>, %arg5: memref<1x32xf32, #tpu.memory_space<vmem>>, %arg6: memref<32x64xf32, #tpu.memory_space<vmem>>, %arg7: memref<1x64xf32, #tpu.memory_space<vmem>>, %arg8: memref<32x32xf32, #tpu.memory_space<vmem>>, %arg9: memref<1x32xf32, #tpu.memory_space<vmem>>, %arg10: memref<1x32xf32, #tpu.memory_space<vmem>>, %arg11: memref<1x32xf32, #tpu.memory_space<vmem>>, %arg12: memref<1x8x32xf32, #tpu.memory_space<vmem>>, %arg13: memref<1x8x12xf32, #tpu.memory_space<vmem>>) attributes {dimension_semantics = [#tpu.dimension_semantics<parallel>], iteration_bounds = array<i64: 2>, scalar_prefetch = 0 : i64, scratch_operands = 0 : i64, tpu.core_type = #tpu.core_type<tc>, window_params = [{transform_indices = @transform_0, window_bounds = array<i64: 1, 8, 32>}, {transform_indices = @transform_1, window_bounds = array<i64: 1, 12, 32>}, {transform_indices = @transform_2, window_bounds = array<i64: 1, 8, 12>}, {pipeline_mode = #tpu.pipeline_mode<synchronous>, transform_indices = @transform_3, window_bounds = array<i64: 32, 32>}, {pipeline_mode = #tpu.pipeline_mode<synchronous>, transform_indices = @transform_4, window_bounds = array<i64: 1, 32>}, {pipeline_mode = #tpu.pipeline_mode<synchronous>, transform_indices = @transform_5, window_bounds = array<i64: 32, 64>}, {pipeline_mode = #tpu.pipeline_mode<synchronous>, transform_indices = @transform_6, window_bounds = array<i64: 1, 64>}, {pipeline_mode = #tpu.pipeline_mode<synchronous>, transform_indices = @transform_7, window_bounds = array<i64: 32, 32>}, {pipeline_mode = #tpu.pipeline_mode<synchronous>, transform_indices = @transform_8, window_bounds = array<i64: 1, 32>}, {pipeline_mode = #tpu.pipeline_mode<synchronous>, transform_indices = @transform_9, window_bounds = array<i64: 1, 32>}, {pipeline_mode = #tpu.pipeline_mode<synchronous>, transform_indices = @transform_10, window_bounds = array<i64: 1, 32>}, {transform_indices = @transform_11, window_bounds = array<i64: 1, 8, 32>}, {transform_indices = @transform_12, window_bounds = array<i64: 1, 8, 12>}]} {
    %c0 = arith.constant 0 : index
    %c0_0 = arith.constant 0 : index
    %c0_1 = arith.constant 0 : index
    %0 = vector.load %arg1[%c0, %c0_0, %c0_1] : memref<1x8x32xf32, #tpu.memory_space<vmem>>, vector<1x8x32xf32>
    %1 = vector.shape_cast %0 : vector<1x8x32xf32> to vector<8x32xf32>
    %c0_2 = arith.constant 0 : index
    %c0_3 = arith.constant 0 : index
    %2 = vector.load %arg4[%c0_2, %c0_3] : memref<32x32xf32, #tpu.memory_space<vmem>>, vector<32x32xf32>
    %cst = arith.constant dense<0.000000e+00> : vector<8x32xf32>
    %3 = tpu.matmul %1, %2, %cst {dimension_numbers = #tpu.dot_dimension_numbers<[1], [0], [0], [1], [0, 0, 1, 1], [], []>} : vector<8x32xf32>, vector<32x32xf32>, vector<8x32xf32> -> vector<8x32xf32>
    %c0_4 = arith.constant 0 : index
    %c0_5 = arith.constant 0 : index
    %4 = vector.load %arg5[%c0_4, %c0_5] : memref<1x32xf32, #tpu.memory_space<vmem>>, vector<1x32xf32>
    %5 = vector.broadcast %4 : vector<1x32xf32> to vector<8x32xf32>
    %6 = arith.addf %3, %5 : vector<8x32xf32>
    %c0_6 = arith.constant 0 : index
    %c0_7 = arith.constant 0 : index
    %c0_8 = arith.constant 0 : index
    %7 = vector.load %arg2[%c0_6, %c0_7, %c0_8] : memref<1x12x32xf32, #tpu.memory_space<vmem>>, vector<1x12x32xf32>
    %8 = vector.shape_cast %7 : vector<1x12x32xf32> to vector<12x32xf32>
    %c0_9 = arith.constant 0 : index
    %c0_10 = arith.constant 0 : index
    %9 = vector.load %arg6[%c0_9, %c0_10] : memref<32x64xf32, #tpu.memory_space<vmem>>, vector<32x64xf32>
    %cst_11 = arith.constant dense<0.000000e+00> : vector<12x64xf32>
    %10 = tpu.matmul %8, %9, %cst_11 {dimension_numbers = #tpu.dot_dimension_numbers<[1], [0], [0], [1], [0, 0, 1, 1], [], []>} : vector<12x32xf32>, vector<32x64xf32>, vector<12x64xf32> -> vector<12x64xf32>
    %c0_12 = arith.constant 0 : index
    %c0_13 = arith.constant 0 : index
    %11 = vector.load %arg7[%c0_12, %c0_13] : memref<1x64xf32, #tpu.memory_space<vmem>>, vector<1x64xf32>
    %12 = vector.broadcast %11 : vector<1x64xf32> to vector<12x64xf32>
    %13 = arith.addf %10, %12 : vector<12x64xf32>
    %14 = vector.extract_strided_slice %13 {offsets = [0, 0], sizes = [12, 32], strides = [1, 1]} : vector<12x64xf32> to vector<12x32xf32>
    %15 = vector.extract_strided_slice %13 {offsets = [0, 32], sizes = [12, 32], strides = [1, 1]} : vector<12x64xf32> to vector<12x32xf32>
    %c0_14 = arith.constant 0 : index
    %c0_15 = arith.constant 0 : index
    %c0_16 = arith.constant 0 : index
    %16 = vector.load %arg3[%c0_14, %c0_15, %c0_16] : memref<1x8x12xf32, #tpu.memory_space<vmem>>, vector<1x8x12xf32>
    %17 = vector.shape_cast %16 : vector<1x8x12xf32> to vector<8x12xf32>
    %c0_17 = arith.constant 0 : index
    %c0_18 = arith.constant 0 : index
    %18 = vector.load %arg8[%c0_17, %c0_18] : memref<32x32xf32, #tpu.memory_space<vmem>>, vector<32x32xf32>
    %cst_19 = arith.constant 0.000000e+00 : f32
    %19 = vector.broadcast %cst_19 : f32 to vector<8x32xf32>
    %cst_20 = arith.constant 0.000000e+00 : f32
    %20 = vector.broadcast %cst_20 : f32 to vector<8x12xf32>
    %21 = vector.extract_strided_slice %6 {offsets = [0, 0], sizes = [8, 16], strides = [1, 1]} : vector<8x32xf32> to vector<8x16xf32>
    %22 = vector.extract_strided_slice %14 {offsets = [0, 0], sizes = [12, 16], strides = [1, 1]} : vector<12x32xf32> to vector<12x16xf32>
    %cst_21 = arith.constant dense<0.000000e+00> : vector<8x12xf32>
    %23 = tpu.matmul %21, %22, %cst_21 {dimension_numbers = #tpu.dot_dimension_numbers<[1], [1], [0], [0], [0, 0, 1, 0], [], []>} : vector<8x16xf32>, vector<12x16xf32>, vector<8x12xf32> -> vector<8x12xf32>
    %cst_22 = arith.constant 2.500000e-01 : f32
    %24 = vector.broadcast %cst_22 : f32 to vector<8x12xf32>
    %25 = arith.mulf %23, %24 : vector<8x12xf32>
    %26 = arith.addf %25, %17 : vector<8x12xf32>
    %cst_23 = arith.constant dense<0xFF800000> : vector<8xf32>
    %27 = vector.multi_reduction <maximumf>, %26, %cst_23 [1] : vector<8x12xf32> to vector<8xf32>
    %28 = vector.shape_cast %27 : vector<8xf32> to vector<8x1xf32>
    %29 = vector.broadcast %28 : vector<8x1xf32> to vector<8x12xf32>
    %30 = arith.subf %26, %29 : vector<8x12xf32>
    %31 = math.exp %30 : vector<8x12xf32>
    %cst_24 = arith.constant dense<0.000000e+00> : vector<8xf32>
    %32 = vector.multi_reduction <add>, %31, %cst_24 [1] : vector<8x12xf32> to vector<8xf32>
    %33 = vector.shape_cast %32 : vector<8xf32> to vector<8x1xf32>
    %34 = tpu.reciprocal %33 {approx = true} : vector<8x1xf32> -> vector<8x1xf32>
    %35 = vector.broadcast %34 : vector<8x1xf32> to vector<8x12xf32>
    %36 = arith.mulf %31, %35 : vector<8x12xf32>
    %37 = arith.addf %20, %36 : vector<8x12xf32>
    %38 = vector.extract_strided_slice %15 {offsets = [0, 0], sizes = [12, 16], strides = [1, 1]} : vector<12x32xf32> to vector<12x16xf32>
    %cst_25 = arith.constant dense<0.000000e+00> : vector<8x16xf32>
    %39 = tpu.matmul %36, %38, %cst_25 {dimension_numbers = #tpu.dot_dimension_numbers<[1], [0], [0], [1], [0, 0, 1, 1], [], []>} : vector<8x12xf32>, vector<12x16xf32>, vector<8x16xf32> -> vector<8x16xf32>
    %40 = vector.extract_strided_slice %18 {offsets = [0, 0], sizes = [16, 32], strides = [1, 1]} : vector<32x32xf32> to vector<16x32xf32>
    %cst_26 = arith.constant dense<0.000000e+00> : vector<8x32xf32>
    %41 = tpu.matmul %39, %40, %cst_26 {dimension_numbers = #tpu.dot_dimension_numbers<[1], [0], [0], [1], [0, 0, 1, 1], [], []>} : vector<8x16xf32>, vector<16x32xf32>, vector<8x32xf32> -> vector<8x32xf32>
    %42 = arith.addf %19, %41 : vector<8x32xf32>
    %43 = vector.extract_strided_slice %6 {offsets = [0, 16], sizes = [8, 16], strides = [1, 1]} : vector<8x32xf32> to vector<8x16xf32>
    %44 = vector.extract_strided_slice %14 {offsets = [0, 16], sizes = [12, 16], strides = [1, 1]} : vector<12x32xf32> to vector<12x16xf32>
    %cst_27 = arith.constant dense<0.000000e+00> : vector<8x12xf32>
    %45 = tpu.matmul %43, %44, %cst_27 {dimension_numbers = #tpu.dot_dimension_numbers<[1], [1], [0], [0], [0, 0, 1, 0], [], []>} : vector<8x16xf32>, vector<12x16xf32>, vector<8x12xf32> -> vector<8x12xf32>
    %cst_28 = arith.constant 2.500000e-01 : f32
    %46 = vector.broadcast %cst_28 : f32 to vector<8x12xf32>
    %47 = arith.mulf %45, %46 : vector<8x12xf32>
    %48 = arith.addf %47, %17 : vector<8x12xf32>
    %cst_29 = arith.constant dense<0xFF800000> : vector<8xf32>
    %49 = vector.multi_reduction <maximumf>, %48, %cst_29 [1] : vector<8x12xf32> to vector<8xf32>
    %50 = vector.shape_cast %49 : vector<8xf32> to vector<8x1xf32>
    %51 = vector.broadcast %50 : vector<8x1xf32> to vector<8x12xf32>
    %52 = arith.subf %48, %51 : vector<8x12xf32>
    %53 = math.exp %52 : vector<8x12xf32>
    %cst_30 = arith.constant dense<0.000000e+00> : vector<8xf32>
    %54 = vector.multi_reduction <add>, %53, %cst_30 [1] : vector<8x12xf32> to vector<8xf32>
    %55 = vector.shape_cast %54 : vector<8xf32> to vector<8x1xf32>
    %56 = tpu.reciprocal %55 {approx = true} : vector<8x1xf32> -> vector<8x1xf32>
    %57 = vector.broadcast %56 : vector<8x1xf32> to vector<8x12xf32>
    %58 = arith.mulf %53, %57 : vector<8x12xf32>
    %59 = arith.addf %37, %58 : vector<8x12xf32>
    %60 = vector.extract_strided_slice %15 {offsets = [0, 16], sizes = [12, 16], strides = [1, 1]} : vector<12x32xf32> to vector<12x16xf32>
    %cst_31 = arith.constant dense<0.000000e+00> : vector<8x16xf32>
    %61 = tpu.matmul %58, %60, %cst_31 {dimension_numbers = #tpu.dot_dimension_numbers<[1], [0], [0], [1], [0, 0, 1, 1], [], []>} : vector<8x12xf32>, vector<12x16xf32>, vector<8x16xf32> -> vector<8x16xf32>
    %62 = vector.extract_strided_slice %18 {offsets = [16, 0], sizes = [16, 32], strides = [1, 1]} : vector<32x32xf32> to vector<16x32xf32>
    %cst_32 = arith.constant dense<0.000000e+00> : vector<8x32xf32>
    %63 = tpu.matmul %61, %62, %cst_32 {dimension_numbers = #tpu.dot_dimension_numbers<[1], [0], [0], [1], [0, 0, 1, 1], [], []>} : vector<8x16xf32>, vector<16x32xf32>, vector<8x32xf32> -> vector<8x32xf32>
    %64 = arith.addf %42, %63 : vector<8x32xf32>
    %cst_33 = arith.constant 5.000000e-01 : f32
    %65 = vector.broadcast %cst_33 : f32 to vector<8x12xf32>
    %66 = arith.mulf %59, %65 : vector<8x12xf32>
    %67 = arith.addf %1, %64 : vector<8x32xf32>
    %c0_34 = arith.constant 0 : index
    %c0_35 = arith.constant 0 : index
    %68 = vector.load %arg9[%c0_34, %c0_35] : memref<1x32xf32, #tpu.memory_space<vmem>>, vector<1x32xf32>
    %69 = vector.broadcast %68 : vector<1x32xf32> to vector<8x32xf32>
    %70 = arith.addf %67, %69 : vector<8x32xf32>
    %c0_36 = arith.constant 0 : index
    %c0_37 = arith.constant 0 : index
    %71 = vector.load %arg10[%c0_36, %c0_37] : memref<1x32xf32, #tpu.memory_space<vmem>>, vector<1x32xf32>
    %c0_38 = arith.constant 0 : index
    %c0_39 = arith.constant 0 : index
    %72 = vector.load %arg11[%c0_38, %c0_39] : memref<1x32xf32, #tpu.memory_space<vmem>>, vector<1x32xf32>
    %cst_40 = arith.constant dense<0.000000e+00> : vector<8xf32>
    %73 = vector.multi_reduction <add>, %70, %cst_40 [1] : vector<8x32xf32> to vector<8xf32>
    %74 = vector.shape_cast %73 : vector<8xf32> to vector<8x1xf32>
    %cst_41 = arith.constant 3.200000e+01 : f32
    %75 = vector.broadcast %cst_41 : f32 to vector<8x1xf32>
    %76 = arith.divf %74, %75 : vector<8x1xf32>
    %77 = vector.broadcast %76 : vector<8x1xf32> to vector<8x32xf32>
    %78 = arith.subf %70, %77 : vector<8x32xf32>
    %79 = arith.mulf %78, %78 : vector<8x32xf32>
    %cst_42 = arith.constant dense<0.000000e+00> : vector<8xf32>
    %80 = vector.multi_reduction <add>, %79, %cst_42 [1] : vector<8x32xf32> to vector<8xf32>
    %81 = vector.shape_cast %80 : vector<8xf32> to vector<8x1xf32>
    %cst_43 = arith.constant 3.200000e+01 : f32
    %82 = vector.broadcast %cst_43 : f32 to vector<8x1xf32>
    %83 = arith.divf %81, %82 : vector<8x1xf32>
    %cst_44 = arith.constant 9.99999974E-6 : f32
    %84 = vector.broadcast %cst_44 : f32 to vector<8x1xf32>
    %85 = arith.addf %83, %84 : vector<8x1xf32>
    %86 = math.rsqrt %85 : vector<8x1xf32>
    %87 = vector.broadcast %86 : vector<8x1xf32> to vector<8x32xf32>
    %88 = arith.mulf %78, %87 : vector<8x32xf32>
    %89 = vector.broadcast %71 : vector<1x32xf32> to vector<8x32xf32>
    %90 = arith.mulf %88, %89 : vector<8x32xf32>
    %91 = vector.broadcast %72 : vector<1x32xf32> to vector<8x32xf32>
    %92 = arith.addf %90, %91 : vector<8x32xf32>
    %c0_45 = arith.constant 0 : index
    %c0_46 = arith.constant 0 : index
    %c0_47 = arith.constant 0 : index
    %93 = vector.load %arg12[%c0_45, %c0_46, %c0_47] : memref<1x8x32xf32, #tpu.memory_space<vmem>>, vector<1x8x32xf32>
    %94 = vector.shape_cast %93 : vector<1x8x32xf32> to vector<8x32xf32>
    %95 = vector.shape_cast %92 : vector<8x32xf32> to vector<1x8x32xf32>
    tpu.vector_store %arg12[%c0_45, %c0_46, %c0_47], %95 {strides = array<i32>} : memref<1x8x32xf32, #tpu.memory_space<vmem>>, vector<1x8x32xf32>,
    %c0_48 = arith.constant 0 : index
    %c0_49 = arith.constant 0 : index
    %c0_50 = arith.constant 0 : index
    %96 = vector.load %arg13[%c0_48, %c0_49, %c0_50] : memref<1x8x12xf32, #tpu.memory_space<vmem>>, vector<1x8x12xf32>
    %97 = vector.shape_cast %96 : vector<1x8x12xf32> to vector<8x12xf32>
    %98 = vector.shape_cast %66 : vector<8x12xf32> to vector<1x8x12xf32>
    tpu.vector_store %arg13[%c0_48, %c0_49, %c0_50], %98 {strides = array<i32>} : memref<1x8x12xf32, #tpu.memory_space<vmem>>, vector<1x8x12xf32>,
    return
  }
  func.func @transform_0(%arg0: i32) -> (i32, i32, i32) {
    %c0_i32 = arith.constant 0 : i32
    %c0_i32_0 = arith.constant 0 : i32
    %c0_i32_1 = arith.constant 0 : i32
    return %arg0, %c0_i32, %c0_i32_0 : i32, i32, i32
  }
  func.func @transform_1(%arg0: i32) -> (i32, i32, i32) {
    %c0_i32 = arith.constant 0 : i32
    %c0_i32_0 = arith.constant 0 : i32
    %c0_i32_1 = arith.constant 0 : i32
    return %arg0, %c0_i32, %c0_i32_0 : i32, i32, i32
  }
  func.func @transform_2(%arg0: i32) -> (i32, i32, i32) {
    %c0_i32 = arith.constant 0 : i32
    %c0_i32_0 = arith.constant 0 : i32
    %c0_i32_1 = arith.constant 0 : i32
    return %arg0, %c0_i32, %c0_i32_0 : i32, i32, i32
  }
  func.func @transform_3(%arg0: i32) -> (i32, i32) {
    %c0_i32 = arith.constant 0 : i32
    %c0_i32_0 = arith.constant 0 : i32
    %c0_i32_1 = arith.constant 0 : i32
    return %c0_i32, %c0_i32_0 : i32, i32
  }
  func.func @transform_4(%arg0: i32) -> (i32, i32) {
    %c0_i32 = arith.constant 0 : i32
    %c0_i32_0 = arith.constant 0 : i32
    %c0_i32_1 = arith.constant 0 : i32
    return %c0_i32, %c0_i32_0 : i32, i32
  }
  func.func @transform_5(%arg0: i32) -> (i32, i32) {
    %c0_i32 = arith.constant 0 : i32
    %c0_i32_0 = arith.constant 0 : i32
    %c0_i32_1 = arith.constant 0 : i32
    return %c0_i32, %c0_i32_0 : i32, i32
  }
  func.func @transform_6(%arg0: i32) -> (i32, i32) {
    %c0_i32 = arith.constant 0 : i32
    %c0_i32_0 = arith.constant 0 : i32
    %c0_i32_1 = arith.constant 0 : i32
    return %c0_i32, %c0_i32_0 : i32, i32
  }
  func.func @transform_7(%arg0: i32) -> (i32, i32) {
    %c0_i32 = arith.constant 0 : i32
    %c0_i32_0 = arith.constant 0 : i32
    %c0_i32_1 = arith.constant 0 : i32
    return %c0_i32, %c0_i32_0 : i32, i32
  }
  func.func @transform_8(%arg0: i32) -> (i32, i32) {
    %c0_i32 = arith.constant 0 : i32
    %c0_i32_0 = arith.constant 0 : i32
    %c0_i32_1 = arith.constant 0 : i32
    return %c0_i32, %c0_i32_0 : i32, i32
  }
  func.func @transform_9(%arg0: i32) -> (i32, i32) {
    %c0_i32 = arith.constant 0 : i32
    %c0_i32_0 = arith.constant 0 : i32
    %c0_i32_1 = arith.constant 0 : i32
    return %c0_i32, %c0_i32_0 : i32, i32
  }
  func.func @transform_10(%arg0: i32) -> (i32, i32) {
    %c0_i32 = arith.constant 0 : i32
    %c0_i32_0 = arith.constant 0 : i32
    %c0_i32_1 = arith.constant 0 : i32
    return %c0_i32, %c0_i32_0 : i32, i32
  }
  func.func @transform_11(%arg0: i32) -> (i32, i32, i32) {
    %c0_i32 = arith.constant 0 : i32
    %c0_i32_0 = arith.constant 0 : i32
    %c0_i32_1 = arith.constant 0 : i32
    return %arg0, %c0_i32, %c0_i32_0 : i32, i32, i32
  }
  func.func @transform_12(%arg0: i32) -> (i32, i32, i32) {
    %c0_i32 = arith.constant 0 : i32
    %c0_i32_0 = arith.constant 0 : i32
    %c0_i32_1 = arith.constant 0 : i32
    return %arg0, %c0_i32, %c0_i32_0 : i32, i32, i32
  }
}

module attributes {stable_mosaic.version = 11 : i64} {
  func.func @_linear_kernel(%arg0: i32, %arg1: i32, %arg2: i32, %arg3: memref<16x32xf32, #tpu.memory_space<vmem>>, %arg4: memref<32x40xf32, #tpu.memory_space<vmem>>, %arg5: memref<1x40xf32, #tpu.memory_space<vmem>>, %arg6: memref<16x40xf32, #tpu.memory_space<vmem>>, %arg7: memref<16x40xf32, #tpu.memory_space<vmem>>) attributes {dimension_semantics = [#tpu.dimension_semantics<parallel>, #tpu.dimension_semantics<parallel>, #tpu.dimension_semantics<arbitrary>], iteration_bounds = array<i64: 1, 1, 1>, scalar_prefetch = 0 : i64, scratch_operands = 1 : i64, tpu.core_type = #tpu.core_type<tc>, window_params = [{transform_indices = @transform_0, window_bounds = array<i64: 16, 32>}, {transform_indices = @transform_1, window_bounds = array<i64: 32, 40>}, {transform_indices = @transform_2, window_bounds = array<i64: 1, 40>}, {transform_indices = @transform_3, window_bounds = array<i64: 16, 40>}]} {
    %c0_i32 = arith.constant 0 : i32
    %0 = arith.cmpi eq, %arg2, %c0_i32 : i32
    %1 = arith.extui %0 : i1 to i32
    %c0_i32_0 = arith.constant 0 : i32
    %2 = arith.cmpi ne, %1, %c0_i32_0 : i32
    scf.if %2 {
      %cst_10 = arith.constant 0.000000e+00 : f32
      %12 = vector.broadcast %cst_10 : f32 to vector<16x40xf32>
      %c0_11 = arith.constant 0 : index
      %c0_12 = arith.constant 0 : index
      %13 = vector.load %arg7[%c0_11, %c0_12] : memref<16x40xf32, #tpu.memory_space<vmem>>, vector<16x40xf32>
      tpu.vector_store %arg7[%c0_11, %c0_12], %12 {strides = array<i32>} : memref<16x40xf32, #tpu.memory_space<vmem>>, vector<16x40xf32>,
    } else {
    }
    %c0 = arith.constant 0 : index
    %c0_1 = arith.constant 0 : index
    %3 = vector.load %arg7[%c0, %c0_1] : memref<16x40xf32, #tpu.memory_space<vmem>>, vector<16x40xf32>
    %c0_2 = arith.constant 0 : index
    %c0_3 = arith.constant 0 : index
    %4 = vector.load %arg3[%c0_2, %c0_3] : memref<16x32xf32, #tpu.memory_space<vmem>>, vector<16x32xf32>
    %c0_4 = arith.constant 0 : index
    %c0_5 = arith.constant 0 : index
    %5 = vector.load %arg4[%c0_4, %c0_5] : memref<32x40xf32, #tpu.memory_space<vmem>>, vector<32x40xf32>
    %cst = arith.constant dense<0.000000e+00> : vector<16x40xf32>
    %6 = tpu.matmul %4, %5, %cst {dimension_numbers = #tpu.dot_dimension_numbers<[1], [0], [0], [1], [0, 0, 1, 1], [], []>} : vector<16x32xf32>, vector<32x40xf32>, vector<16x40xf32> -> vector<16x40xf32>
    %7 = arith.addf %3, %6 : vector<16x40xf32>
    %c0_6 = arith.constant 0 : index
    %c0_7 = arith.constant 0 : index
    %8 = vector.load %arg7[%c0_6, %c0_7] : memref<16x40xf32, #tpu.memory_space<vmem>>, vector<16x40xf32>
    tpu.vector_store %arg7[%c0_6, %c0_7], %7 {strides = array<i32>} : memref<16x40xf32, #tpu.memory_space<vmem>>, vector<16x40xf32>,
    %c0_i32_8 = arith.constant 0 : i32
    %9 = arith.cmpi eq, %arg2, %c0_i32_8 : i32
    %10 = arith.extui %9 : i1 to i32
    %c0_i32_9 = arith.constant 0 : i32
    %11 = arith.cmpi ne, %10, %c0_i32_9 : i32
    scf.if %11 {
      %c0_10 = arith.constant 0 : index
      %c0_11 = arith.constant 0 : index
      %12 = vector.load %arg7[%c0_10, %c0_11] : memref<16x40xf32, #tpu.memory_space<vmem>>, vector<16x40xf32>
      %c0_12 = arith.constant 0 : index
      %c0_13 = arith.constant 0 : index
      %13 = vector.load %arg5[%c0_12, %c0_13] : memref<1x40xf32, #tpu.memory_space<vmem>>, vector<1x40xf32>
      %14 = vector.broadcast %13 : vector<1x40xf32> to vector<16x40xf32>
      %15 = arith.addf %12, %14 : vector<16x40xf32>
      %c0_14 = arith.constant 0 : index
      %c0_15 = arith.constant 0 : index
      %16 = vector.load %arg6[%c0_14, %c0_15] : memref<16x40xf32, #tpu.memory_space<vmem>>, vector<16x40xf32>
      tpu.vector_store %arg6[%c0_14, %c0_15], %15 {strides = array<i32>} : memref<16x40xf32, #tpu.memory_space<vmem>>, vector<16x40xf32>,
    } else {
    }
    return
  }
  func.func @transform_0(%arg0: i32, %arg1: i32, %arg2: i32) -> (i32, i32) {
    %c0_i32 = arith.constant 0 : i32
    return %arg0, %arg2 : i32, i32
  }
  func.func @transform_1(%arg0: i32, %arg1: i32, %arg2: i32) -> (i32, i32) {
    %c0_i32 = arith.constant 0 : i32
    return %arg2, %arg1 : i32, i32
  }
  func.func @transform_2(%arg0: i32, %arg1: i32, %arg2: i32) -> (i32, i32) {
    %c0_i32 = arith.constant 0 : i32
    %c0_i32_0 = arith.constant 0 : i32
    return %c0_i32, %arg1 : i32, i32
  }
  func.func @transform_3(%arg0: i32, %arg1: i32, %arg2: i32) -> (i32, i32) {
    %c0_i32 = arith.constant 0 : i32
    return %arg0, %arg1 : i32, i32
  }
}

</mosaic_0001>

<bundles_post_ra>
// kernel: decoder_forward.13
= control target key start
LH: loop header
LB: loop body
LE: loop exit
PB: predicated region body
PF: predicated region fallthrough
CT: control target
= control target key end

     0   :  { %vm30_vm0 = vcmask 261120   ;;  %vm19_vm1 = vcmask 326656   ;;  %v195_v3 = vmov 0.0   ;;  %s251_s0 = inlined_call_operand.vmem [shape: f32[16,32], index: 0, kind: input, shape index: {}]   ;;  %s252_s1 = inlined_call_operand.vmem [shape: f32[32,40], index: 1, kind: input, shape index: {}]   ;;  %s253_s2 = inlined_call_operand.vmem [shape: f32[1,40], index: 2, kind: input, shape index: {}]   ;;  %s254_s3 = inlined_call_operand.hbm [shape: f32[16,40], index: 3, kind: output, shape index: {}]  }
   0x1   :  { %v29_v0 = vld [vmem:[%s252_s1 + $0x18] sm:$0xff]  ;;  %v28_v1 = vld [vmem:[%s252_s1 + $0x10] sm:$0xff]  ;;  %v24_v2 = vld [vmem:[%s251_s0] sm:$0xff]  ;;  %21 = vst.msk [vmem:[#allocation2 + $0x8] sm:$0xff] %vm19_vm1, %v195_v3 }
   0x2   :  { %158 = vmatprep.subr.mxu0 %v29_v0  ;;  %20 = vst.msk [vmem:[#allocation2] sm:$0xff] %vm19_vm1, %v195_v3  ;;  %v27_v4 = vld [vmem:[%s252_s1 + $0x8] sm:$0xff]  ;;  %166 = vmatprep.mubr.msk.f32.mxu0 %vm30_vm0, %v24_v2 }
   0x3   :  { %159 = vmatpush3.msra.mxu0 %v29_v0 }
   0x4   :  { %8 = vsyncpa [#allocation4], 0  ;;  %160 = vmatprep.subr.mxu0 %v28_v1  ;;  %v26_v5 = vld [vmem:[%s252_s1] sm:$0xff]  ;;  %v25_v6 = vld [vmem:[%s251_s0 + $0x8] sm:$0xff]  ;;  %s196_s25 = smov [#allocation3]  }
   0x5   :  { %161 = vmatpush3.msra.mxu0 %v28_v1  ;;  %v151_v13 = vld [vmem:[%s253_s2] ss:$0 sm:$0xff]  ;;  %s138_s0 = sshll.u32 %s196_s25, 4  ;;  %s139_s0 = int_to_ptr.vmem [resolvable:$true] %s138_s0 }
   0x6   :  { %162 = vmatprep.subr.mxu0 %v27_v4  ;;  %s173_s26 = scalar_lea.vmem %s139_s0, 256  ;;  %p178_p1 = scmp.lt.s32.totalorder %s139_s0, %s139_s0 }
   0x7   :  { %163 = vmatpush3.msra.mxu0 %v27_v4  ;;  %p174_p0 = scmp.ne.s32.totalorder %s139_s0, %s173_s26  ;;  %p179_p2 = scmp.lt.s32.totalorder %s173_s26, %s173_s26 }
   0x8   :  { %164 = vmatprep.subr.mxu0 %v26_v5  ;;  %v23_v7 = vld [vmem:[#allocation2 + $0x8] sm:$0xff] }
   0x9   :  { %165 = vmatpush3.msra.mxu0 %v26_v5  ;;  %v22_v9 = vld [vmem:[#allocation2] sm:$0xff]  ;;  %p180_p3 = por %p179_p2, %p178_p1 }
   0xa   :  { %167 = vmatmul.mubr.msk.f32.vlgmr.msra.gmra.mxu0 %vm30_vm0, %v25_v6 }
   0xb   :  { %p181_p4 = pnand %p180_p3, %p174_p0 }
  0xca   :  { %v168_v8 = vpop.f32.mrf.mxu0 }
  0xcb   :  { %v113_v10 = vadd.f32 %v168_v8, %v23_v7 }
  0xcc   :  { %v103_v11 = vpop.f32.mrf.mxu0 }
  0xcd   :  { %116 = vst.msk [vmem:[#allocation2 + $0x8] sm:$0xff] %vm19_vm1, %v113_v10  ;;  %v112_v12 = vadd.f32 %v103_v11, %v22_v9 }
  0xcf   :  { %115 = vst.msk [vmem:[#allocation2] sm:$0xff] %vm19_vm1, %v112_v12 }
  0xd4   :  { %v121_v14 = vld [vmem:[#allocation2 + $0x8] sm:$0xff] }
  0xd5   :  { %v130_v15 = vadd.f32 %v151_v13, %v121_v14 }
  0xd6   :  { %v120_v16 = vld [vmem:[#allocation2] sm:$0xff] }
  0xd7   :  { %v129_v17 = vadd.f32 %v151_v13, %v120_v16  ;;  %132 = vst.msk [vmem:[#allocation3 + $0x8] sm:$0xff] %vm19_vm1, %v130_v15 }
  0xd9   :  { %131 = vst.msk [vmem:[#allocation3] sm:$0xff] %vm19_vm1, %v129_v17 }
  0xda   :  { %184 = shalt.err (!%p181_p4)
}
  0xdb   :  { %s197_s27 = smov 128   ;;  %s198_s2 = smov 8  }
  0xdc   :  { %144 = dma.vmem_to_hbm [thread:$0]  %s139_s0, 256, %s254_s3, [#allocation4], %s197_s27, %s197_s27, %s198_s2  }
  0xdd   :  { %193 = dma.done.wait [#allocation4], 256  }
  0xde   :  { %194 = vsyncadd [#allocation4], 4294967040 }
  0xdf   :  { %148 = vsyncpa [#allocation4], 1 }

// kernel: decoder_forward.9
= control target key start
LH: loop header
LB: loop body
LE: loop exit
PB: predicated region body
PF: predicated region fallthrough
CT: control target
= control target key end

     0   :  { %vm39_vm0 = vcmask 261120   ;;  %vm192_vm3 = vcmask 523264   ;;  %s509_s1 = inlined_call_operand.vmem [shape: f32[32,64], index: 1, kind: input, shape index: {}]   ;;  %s510_s0 = inlined_call_operand.vmem [shape: f32[16,32], index: 0, kind: input, shape index: {}]   ;;  %s511_s3 = inlined_call_operand.vmem [shape: f32[64,32], index: 3, kind: input, shape index: {}]   ;;  %s512_s2 = inlined_call_operand.vmem [shape: f32[1,64], index: 2, kind: input, shape index: {}]   ;;  %s513_s4 = inlined_call_operand.vmem [shape: f32[1,32], index: 4, kind: input, shape index: {}]   ;;  %s514_s5 = inlined_call_operand.vmem [shape: f32[1,32], index: 5, kind: input, shape index: {}]   ;;  %s515_s6 = inlined_call_operand.vmem [shape: f32[1,32], index: 6, kind: input, shape index: {}]   ;;  %s516_s7 = inlined_call_operand.vmem [shape: f32[16,32], index: 7, kind: output, shape index: {}]  }
   0x1   :  { %v31_v0 = vld [vmem:[%s509_s1 + $0x18] sm:$0xff]  ;;  %v30_v1 = vld [vmem:[%s509_s1 + $0x10] sm:$0xff]  ;;  %v442_v2 = vld [vmem:[%s510_s0] sm:$0xff] }
   0x2   :  { %351 = vmatprep.subr.mxu0 %v31_v0  ;;  %v29_v3 = vld [vmem:[%s509_s1 + $0x8] sm:$0xff]  ;;  %359 = vmatprep.mubr.msk.f32.mxu0 %vm39_vm0, %v442_v2  ;;  %v28_v4 = vld [vmem:[%s509_s1] sm:$0xff]  ;;  %v184_v6 = vld [vmem:[%s511_s3 + $0x38] sm:$0xff] }
   0x3   :  { %352 = vmatpush3.msra.mxu0 %v31_v0  ;;  %v455_v5 = vld [vmem:[%s510_s0 + $0x8] sm:$0xff]  ;;  %362 = vmatprep.subr.mxu1 %v184_v6  ;;  %v183_v7 = vld [vmem:[%s511_s3 + $0x30] sm:$0xff]  ;;  %v181_v9 = vld [vmem:[%s511_s3 + $0x20] sm:$0xff] }
   0x4   :  { %353 = vmatprep.subr.mxu0 %v30_v1  ;;  %363 = vmatpush3.msra.mxu1 %v184_v6  ;;  %v182_v8 = vld [vmem:[%s511_s3 + $0x28] sm:$0xff]  ;;  %v180_v10 = vld [vmem:[%s511_s3 + $0x18] sm:$0xff]  ;;  %v179_v11 = vld [vmem:[%s511_s3 + $0x10] sm:$0xff] }
   0x5   :  { %354 = vmatpush3.msra.mxu0 %v30_v1  ;;  %364 = vmatprep.subr.mxu1 %v183_v7  ;;  %v178_v12 = vld [vmem:[%s511_s3 + $0x8] sm:$0xff]  ;;  %v177_v13 = vld [vmem:[%s511_s3] sm:$0xff] }
   0x6   :  { %355 = vmatprep.subr.mxu0 %v29_v3  ;;  %365 = vmatpush3.msra.mxu1 %v183_v7  ;;  %v327_v14 = vld [vmem:[%s512_s2] ss:$0 sm:$0xff] }
   0x7   :  { %356 = vmatpush3.msra.mxu0 %v29_v3  ;;  %366 = vmatprep.subr.mxu1 %v182_v8 }
   0x8   :  { %357 = vmatprep.subr.mxu0 %v28_v4  ;;  %367 = vmatpush3.msra.mxu1 %v182_v8 }
   0x9   :  { %358 = vmatpush3.msra.mxu0 %v28_v4  ;;  %368 = vmatprep.subr.mxu1 %v181_v9 }
   0xa   :  { %360 = vmatmul.mubr.msk.f32.vlgmr.msra.gmra.mxu0 %vm39_vm0, %v455_v5  ;;  %369 = vmatpush3.msra.mxu1 %v181_v9 }
   0xb   :  { %370 = vmatprep.subr.mxu1 %v180_v10 }
   0xc   :  { %371 = vmatpush3.msra.mxu1 %v180_v10  ;;  %v330_v10 = vld [vmem:[%s513_s4] ss:$0 sm:$0xff] }
   0xd   :  { %372 = vmatprep.subr.mxu1 %v179_v11 }
   0xe   :  { %373 = vmatpush3.msra.mxu1 %v179_v11 }
   0xf   :  { %374 = vmatprep.subr.mxu1 %v178_v12 }
  0x10   :  { %375 = vmatpush3.msra.mxu1 %v178_v12 }
  0x11   :  { %376 = vmatprep.subr.mxu1 %v177_v13 }
  0x12   :  { %377 = vmatpush3.msra.mxu1 %v177_v13 }
  0xca   :  { %v361_v15 = vpop.f32.mrf.mxu0 }
  0xcb   :  { %v118_v16 = vadd.f32 %v361_v15, %v327_v14 }
  0xcc   :  { %v112_v17 = vpop.f32.mrf.mxu0 }
  0xcd   :  { %v124_v18 = vmul.f32 0.70710677, %v118_v16  ;;  %v113_v19 = vadd.f32 %v327_v14, %v112_v17  ;;  %v122_v6 = vmul.f32 0.5, %v118_v16 }
  0xcf   :  { %v126_v20 = vsub.f32 0.0, %v124_v18  ;;  %v123_v21 = vmul.f32 0.70710677, %v113_v19  ;;  %vm168_vm1 = vcmp.lt.f32.partialorder %v124_v18, 0.0  ;;  %v121_v3 = vmul.f32 0.5, %v113_v19 }
  0xd1   :  { %v128_v22 = vmax.f32 %v124_v18, %v126_v20  ;;  %v125_v23 = vsub.f32 0.0, %v123_v21  ;;  %vm167_vm2 = vcmp.lt.f32.partialorder %v123_v21, 0.0 }
  0xd3   :  { %v130_v24 = vmul.f32 0.3275911, %v128_v22  ;;  %v127_v25 = vmax.f32 %v123_v21, %v125_v23  ;;  %v156_v29 = vsub.f32 0.0, %v128_v22 }
  0xd5   :  { %v132_v26 = vadd.f32 1.0, %v130_v24  ;;  %v129_v27 = vmul.f32 0.3275911, %v127_v25  ;;  %v155_v30 = vsub.f32 0.0, %v127_v25  ;;  %v158_v31 = vmul.f32 %v156_v29, %v128_v22 }
  0xd7   :  { %381 = vrcp.f32 %v132_v26  ;;  %v131_v28 = vadd.f32 1.0, %v129_v27  ;;  %v157_v33 = vmul.f32 %v155_v30, %v127_v25  ;;  %v161_v35 = vmul.f32 1.442695, %v158_v31 }
  0xd9   :  { %383 = vrcp.f32 %v131_v28  ;;  %v159_v38 = vmul.f32 1.442695, %v157_v33  ;;  %v333_v33 = vld [vmem:[%s514_s5] ss:$0 sm:$0xff] }
  0xda   :  { %385 = vpow2.f32 %v161_v35  ;;  %v334_v35 = vld [vmem:[%s515_s6] ss:$0 sm:$0xff] }
  0xdb   :  { %387 = vpow2.f32 %v159_v38 }
  0xe4   :  { %v382_v32 = vpop.eup %381 }
  0xe5   :  { %v138_v34 = vmul.f32 1.0614054, %v382_v32 }
  0xe6   :  { %v384_v36 = vpop.eup %383 }
  0xe7   :  { %v140_v37 = vadd.f32 -1.4531521, %v138_v34  ;;  %v137_v39 = vmul.f32 1.0614054, %v384_v36  ;;  %v386_v53 = vpop.eup %385 }
  0xe8   :  { %v388_v57 = vpop.eup %387 }
  0xe9   :  { %v142_v40 = vmul.f32 %v382_v32, %v140_v37  ;;  %v139_v41 = vadd.f32 -1.4531521, %v137_v39 }
  0xeb   :  { %v144_v42 = vadd.f32 1.4214138, %v142_v40  ;;  %v141_v43 = vmul.f32 %v384_v36, %v139_v41 }
  0xed   :  { %v146_v44 = vmul.f32 %v382_v32, %v144_v42  ;;  %v143_v45 = vadd.f32 1.4214138, %v141_v43 }
  0xef   :  { %v148_v46 = vadd.f32 -0.28449672, %v146_v44  ;;  %v145_v47 = vmul.f32 %v384_v36, %v143_v45 }
  0xf1   :  { %v150_v48 = vmul.f32 %v382_v32, %v148_v46  ;;  %v147_v49 = vadd.f32 -0.28449672, %v145_v47 }
  0xf3   :  { %v152_v50 = vadd.f32 0.2548296, %v150_v48  ;;  %v149_v51 = vmul.f32 %v384_v36, %v147_v49 }
  0xf5   :  { %v154_v52 = vmul.f32 %v382_v32, %v152_v50  ;;  %v151_v54 = vadd.f32 0.2548296, %v149_v51 }
  0xf7   :  { %v164_v55 = vmul.f32 %v386_v53, %v154_v52  ;;  %v153_v56 = vmul.f32 %v384_v36, %v151_v54 }
  0xf9   :  { %v166_v58 = vsub.f32 1.0, %v164_v55  ;;  %v163_v59 = vmul.f32 %v388_v57, %v153_v56 }
  0xfb   :  { %v170_v60 = vsub.f32 0.0, %v166_v58  ;;  %v165_v61 = vsub.f32 1.0, %v163_v59 }
  0xfd   :  { %v172_v62 = vsel %vm168_vm1, %v170_v60, %v166_v58  ;;  %v169_v63 = vsub.f32 0.0, %v165_v61 }
  0xfe   :  { %v174_v0 = vadd.f32 1.0, %v172_v62 }
  0xff   :  { %v171_v1 = vsel %vm167_vm2, %v169_v63, %v165_v61 }
 0x100   :  { %v173_v4 = vadd.f32 1.0, %v171_v1  ;;  %v176_v8 = vmul.f32 %v174_v0, %v122_v6 }
 0x102   :  { %v175_v7 = vmul.f32 %v173_v4, %v121_v3 }
 0x104   :  { %378 = vmatprep.mubr.msk.f32.mxu1 %vm192_vm3, %v175_v7 }
 0x105   :  { %379 = vmatmul.mubr.msk.f32.vlgmr.msra.gmra.mxu1 %vm192_vm3, %v176_v8 }
 0x1c5   :  { %v380_v9 = vpop.f32.mrf.mxu1 }
 0x1c6   :  { %v271_v12 = vadd.f32 %v380_v9, %v330_v10 }
 0x1c7   :  { %v265_v11 = vpop.f32.mrf.mxu1 }
 0x1c8   :  { %v266_v13 = vadd.f32 %v330_v10, %v265_v11  ;;  %v275_v17 = vadd.f32 %v271_v12, %v455_v5 }
 0x1ca   :  { %v274_v14 = vadd.f32 %v266_v13, %v442_v2  ;;  %v281_v16 = vsel %vm39_vm0, %v275_v17, 0.0 }
 0x1cc   :  { %v278_v15 = vsel %vm39_vm0, %v274_v14, 0.0 }
 0x1cd   :  { %279 = vadd.xlane.f32.xlu0 %v278_v15 }
 0x1d1   :  { %282 = vadd.xlane.f32.xlu0 %v281_v16 }
 0x256   :  { %v280_v18 = vpop.xlane.xlu0 %279 }
 0x257   :  { %v285_v19 = vmul.f32 0.03125, %v280_v18 }
 0x259   :  { %v287_v20 = vsub.f32 %v274_v14, %v285_v19 }
 0x25a   :  { %v283_v21 = vpop.xlane.xlu0 %282 }
 0x25b   :  { %v286_v22 = vmul.f32 0.03125, %v283_v21  ;;  %v289_v23 = vmul.f32 %v287_v20, %v287_v20 }
 0x25d   :  { %v288_v24 = vsub.f32 %v275_v17, %v286_v22  ;;  %v291_v25 = vsel %vm39_vm0, %v289_v23, 0.0 }
 0x25e   :  { %292 = vadd.xlane.f32.xlu1 %v291_v25 }
 0x25f   :  { %v290_v26 = vmul.f32 %v288_v24, %v288_v24 }
 0x261   :  { %v294_v2 = vsel %vm39_vm0, %v290_v26, 0.0 }
 0x262   :  { %295 = vadd.xlane.f32.xlu1 %v294_v2 }
 0x2e7   :  { %v293_v27 = vpop.xlane.xlu1 %292 }
 0x2e8   :  { %v297_v5 = vmul.f32 0.03125, %v293_v27 }
 0x2ea   :  { %v299_v28 = vadd.f32 1e-05, %v297_v5 }
 0x2eb   :  { %v296_v29 = vpop.xlane.xlu1 %295 }
 0x2ec   :  { %389 = vrsqrt.f32 %v299_v28  ;;  %v298_v30 = vmul.f32 0.03125, %v296_v29 }
 0x2ee   :  { %v300_v31 = vadd.f32 1e-05, %v298_v30 }
 0x2f0   :  { %391 = vrsqrt.f32 %v300_v31 }
 0x2f9   :  { %v390_v32 = vpop.eup %389 }
 0x2fa   :  { %v303_v34 = vmul.f32 %v390_v32, %v287_v20 }
 0x2fc   :  { %v311_v36 = vmul.f32 %v333_v33, %v303_v34 }
 0x2fd   :  { %v392_v37 = vpop.eup %391 }
 0x2fe   :  { %v319_v38 = vadd.f32 %v334_v35, %v311_v36  ;;  %v304_v39 = vmul.f32 %v392_v37, %v288_v24 }
 0x300   :  { %321 = vst.msk [vmem:[%s516_s7] sm:$0xff] %vm39_vm0, %v319_v38  ;;  %v312_v40 = vmul.f32 %v333_v33, %v304_v39 }
 0x302   :  { %v320_v41 = vadd.f32 %v334_v35, %v312_v40 }
 0x304   :  { %322 = vst.msk [vmem:[%s516_s7 + $0x8] sm:$0xff] %vm39_vm0, %v320_v41 }

// kernel: decoder_forward.8
= control target key start
LH: loop header
LB: loop body
LE: loop exit
PB: predicated region body
PF: predicated region fallthrough
CT: control target
= control target key end

     0   :  { %s1853_s0 = inlined_call_operand.vmem [shape: f32[2,8,32], index: 0, kind: input, shape index: {}]   ;;  %s1854_s1 = inlined_call_operand.vmem [shape: f32[2,12,32], index: 1, kind: input, shape index: {}]   ;;  %s1855_s2 = inlined_call_operand.vmem [shape: f32[2,8,12], index: 2, kind: input, shape index: {}]   ;;  %s1856_s3 = inlined_call_operand.vmem [shape: f32[32,32], index: 3, kind: input, shape index: {}]   ;;  %s1857_s4 = inlined_call_operand.vmem [shape: f32[1,32], index: 4, kind: input, shape index: {}]   ;;  %s1858_s5 = inlined_call_operand.vmem [shape: f32[32,64], index: 5, kind: input, shape index: {}]   ;;  %s1859_s6 = inlined_call_operand.vmem [shape: f32[1,64], index: 6, kind: input, shape index: {}]   ;;  %s1860_s7 = inlined_call_operand.vmem [shape: f32[32,32], index: 7, kind: input, shape index: {}]   ;;  %s1861_s8 = inlined_call_operand.vmem [shape: f32[1,32], index: 8, kind: input, shape index: {}]   ;;  %s1862_s9 = inlined_call_operand.vmem [shape: f32[1,32], index: 9, kind: input, shape index: {}]   ;;  %s1863_s10 = inlined_call_operand.vmem [shape: f32[1,32], index: 10, kind: input, shape index: {}]   ;;  %s1864_s11 = inlined_call_operand.vmem [shape: f32[2,8,32], index: 11, kind: output, shape index: {0}]   ;;  %s1865_s12 = inlined_call_operand.hbm [shape: f32[2,8,12], index: 12, kind: output, shape index: {1}]  }
   0x1   :  { %1866 = sst [smem:[#allocation6_spill]] %s1853_s0 }
   0x2   :  { %1867 = sst [smem:[#allocation7_spill]] %s1854_s1 }
   0x3   :  { %1868 = sst [smem:[#allocation8_spill]] %s1855_s2 }
   0x4   :  { %18 = vsyncpa [#allocation3], 0 }
   0x5   :  { %20 = vsyncpa [#allocation3 + $0x1], 0  ;;  %s1625_s21 = smov 0   ;;  %s1627_s22 = smov 0  }
   0x6   :  { %s1629_s23 = smov 0   ;;  %s1631_s24 = smov 0  }
   0x7 LB: > { %s1646_s25 = sadd.s32 4294967295, %s1552_s24   ;;  %s1310_s26 = sadd.s32 4294967294, %s1552_s24   ;;  %s1552_s24 = sphi %s1631_s24, %s1879_s24   ;;  %s1548_s23 = sphi %s1629_s23, %s1878_s23   ;;  %s1544_s22 = sphi %s1627_s22, %s1877_s22   ;;  %s1540_s21 = sphi %s1625_s21, %s1876_s21  }
   0x8   : > { %s1650_s27 = sadd.s32 1, %s1552_s24   ;;  %s305_s28 = sadd.s32 1, %s1548_s23 }
   0x9   : > { %s302_s29 = ssub.s32 %s1552_s24, %s1650_s27  ;;  %p315_p0 = scmp.ne.s32.totalorder %s1548_s23, %s1544_s22 }
   0xa   : > { %p303_p1 = scmp.eq.s32.totalorder %s302_s29, 0  ;;  %p316_p2 = scmp.eq.s32.totalorder %s1646_s25, 1 }
   0xb   : > { %p321_p3 = scmp.ne.s32.totalorder %s1544_s22, %s1540_s21  ;;  %p322_p4 = scmp.eq.s32.totalorder %s1310_s26, 1 }
   0xc   : > { %s1661_s30 = scalar_select %p303_p1, %s1548_s23, %s305_s28  }
   0xd   : > { %p1663_p5 = por %p316_p2, %p315_p0  ;;  %p1667_p6 = por %p322_p4, %p321_p3 }
   0xe   : > { %1869 = sst [smem:[#allocation5_spill]] %s1661_s30  ;;  %p1313_p7 = scmp.ge.s32.totalorder %s1552_s24, 1 }
   0xf   : > { %p386_p8 = scmp.lt.s32.totalorder %s1552_s24, 3 }
  0x11   : > { %p387_p9 = pnand %p1313_p7, %p386_p8 }
  0x12   : > { %p440_p10 = scmp.lt.s32.totalorder (!%p387_p9), %s1646_s25, 1  ;;  %s1872_s1 = sld [smem:[#allocation7_spill]] (!%p387_p9) }
  0x13   : > { %390 = sbr.rel (%p387_p9) target bundleno = 1962 (0x7aa), region = 64  ;;  %s1873_s0 = sld [smem:[#allocation6_spill]] (!%p387_p9) }
  0x14   : > { %s1556_s29 = smov (!%p387_p9), 96   ;;  %s1557_s18 = smov (!%p387_p9), 112  }
  0x15   : > { %s1874_s2 = sld [smem:[#allocation8_spill]] (!%p387_p9)  ;;  %s1558_s17 = smov (!%p387_p9), 80  }
  0x16   : > { %s1341_s19 = sshll.u32 (!%p387_p9), %s1646_s25, 7 }
  0x18   : > { %v548_v0 = vld [vmem:[%s1858_s5 + $0x18] sm:$0xff]  ;;  %v547_v1 = vld [vmem:[%s1858_s5 + $0x10] sm:$0xff]  ;;  %v1554_v2 = vmov 0.0   ;;  %v546_v5 = vld [vmem:[%s1858_s5 + $0x8] sm:$0xff]  ;;  %s441_s16 = scalar_select %p440_p10, %s1646_s25, 1  ;;  %vm469_vm0 = vcmask 261120  }
  0x19   : > { %1385 = vmatprep.subr.mxu1 %v548_v0  ;;  %1374 = vmatprep.subr.mxu0 %v1554_v2  ;;  %v461_v3 = vld [vmem:[%s1856_s3 + $0x18] sm:$0xff]  ;;  %v460_v4 = vld [vmem:[%s1856_s3 + $0x10] sm:$0xff]  ;;  %v459_v6 = vld [vmem:[%s1856_s3 + $0x8] sm:$0xff]  ;;  %vm1555_vm1 = vmmov 0   ;;  %vm642_vm2 = vcmask 130048   ;;  %vm745_vm3 = vcmask 1043456  }
  0x1a   : > { %1386 = vmatpush3.msra.mxu1 %v548_v0  ;;  %1375 = vmatpush3.msra.mxu0 %v461_v3  ;;  %v545_v7 = vld [vmem:[%s1858_s5] sm:$0xff]  ;;  %s1698_s26 = sshll.u32 %s441_s16, 3  ;;  %s1344_s28 = sshll.u32 %s441_s16, 4  ;;  %vm724_vm4 = vcmask 97280   ;;  %v639_v39 = vld [vmem:[%s1860_s7 + $0x8] sm:$0xff]  ;;  %v641_v61 = vld [vmem:[%s1860_s7 + $0x18] sm:$0xff] }
  0x1b   : > { %1387 = vmatprep.subr.mxu1 %v547_v1  ;;  %1376 = vmatprep.subr.mxu0 %v1554_v2  ;;  %s448_s30 = scalar_lea.vmem %s1872_s1, %s1344_s28  ;;  %v458_v10 = vld [vmem:[%s1856_s3] sm:$0xff]  ;;  %s443_s16 = scalar_lea.vmem %s1873_s0, %s1698_s26  ;;  %v640_v62 = vld [vmem:[%s1860_s7 + $0x10] sm:$0xff] }
  0x1c   : > { %1388 = vmatpush3.msra.mxu1 %v547_v1  ;;  %1377 = vmatpush3.msra.mxu0 %v460_v4  ;;  %v543_v8 = vld [vmem:[%s448_s30] sm:$0xff]  ;;  %v544_v9 = vld [vmem:[%s448_s30 + $0x8] sm:$0xf]  ;;  %s1201_s28 = scalar_lea.hbm %s1865_s12, %s1341_s19  ;;  %s1559_s0 = smov [#allocation2]  }
  0x1d   : > { %1389 = vmatprep.subr.mxu1 %v546_v5  ;;  %1378 = vmatprep.subr.mxu0 %v1554_v2  ;;  %v1713_v11 = vld [vmem:[%s443_s16] sm:$0xff]  ;;  %s452_s16 = scalar_lea.vmem %s1874_s2, %s1698_s26  ;;  %s1496_s1 = sshll.u32 %s1559_s0, 4  ;;  %s1497_s1 = int_to_ptr.vmem [resolvable:$false] %s1496_s1 }
  0x1e   : > { %1390 = vmatpush3.msra.mxu1 %v546_v5  ;;  %1379 = vmatpush3.msra.mxu0 %v459_v6  ;;  %v1322_v12 = vld [vmem:[%s1859_s6] ss:$0 sm:$0xff]  ;;  %s1498_s2 = scalar_lea.vmem %s1497_s1, 256 }
  0x1f   : > { %1391 = vmatprep.subr.mxu1 %v545_v7  ;;  %1393 = vmatprep.mubr.msk.f32.mxu1 %vm469_vm0, %v543_v8  ;;  %v1320_v17 = vld [vmem:[%s1857_s4] ss:$0 sm:$0xff] }
  0x20   : > { %1392 = vmatpush3.msra.mxu1 %v545_v7  ;;  %1380 = vmatprep.subr.mxu0 %v1554_v2  ;;  %v637_v24 = vld [vmem:[%s452_s16] sm:$0xff] }
  0x21   : > { %1394 = vmatmul.mubr.msk.f32.vlgmr.msra.gmra.mxu1 %vm469_vm0, %v544_v9  ;;  %1381 = vmatpush3.msra.mxu0 %v458_v10  ;;  %v638_v41 = vld [vmem:[%s1860_s7] sm:$0xff] }
  0x22   : > { %1382 = vmatprep.mubr.msk.f32.mxu0 %vm1555_vm1, %v1554_v2  ;;  %1396 = vmatprep.subr.mxu0 %v1554_v2  ;;  %v1337_v7 = vld [vmem:[%s1861_s8] ss:$0 sm:$0xff] }
  0x23   : > { %1383 = vmatmul.mubr.msk.f32.vlgmr.msra.gmra.mxu0 %vm469_vm0, %v1713_v11  ;;  %1403 = vmatprep.subr.mxu1 %v1554_v2 }
  0x24   : > { %1400 = vmatprep.mubr.msk.f32.mxu0 %vm1555_vm1, %v1554_v2  ;;  %1407 = vmatprep.mubr.msk.f32.mxu1 %vm1555_vm1, %v1554_v2 }
  0xe1   : > { %v1395_v13 = vpop.f32.mrf.mxu1 }
  0xe2   : > { %v1729_v14 = vadd.f32 %v1395_v13, %v1322_v12 }
  0xe3   : > { %v628_v15 = vpop.f32.mrf.mxu1  ;;  %v539_v16 = vpop.f32.mrf.mxu0 }
  0xe4   : > { %739 = vrot.lane.b32.xlu1 %v1729_v14, %s1556_s29  ;;  %1397 = vmatpush3.xpose.msk.msra.mxu0 %vm642_vm2, %v1729_v14  ;;  %v1738_v19 = vadd.f32 %v1322_v12, %v628_v15  ;;  %v540_v20 = vadd.f32 %v1320_v17, %v539_v16 }
  0xe5   : > { %1398 = vmatprep.subr.mxu0 %v1554_v2  ;;  %v1384_v18 = vpop.f32.mrf.mxu0 }
  0xe8   : > { %737 = vrot.lane.b32.xlu1 %v1738_v19, %s1556_s29  ;;  %1399 = vmatpush3.xpose.msk.msra.mxu0 %vm642_vm2, %v1738_v19 }
  0xe9   : > { %1417 = vmatprep.subr.mxu0 %v1554_v2 }
  0xeb   : > { %1401 = vmatmul.mubr.msk.f32.vlgmr.msra.gmra.mxu0 %vm642_vm2, %v540_v20 }
  0xec   : > { %820 = vrot.lane.b32.xlu1 %v1738_v19, %s1557_s18  ;;  %1421 = vmatprep.mubr.msk.f32.mxu0 %vm1555_vm1, %v1554_v2 }
  0xf0   : > { %818 = vrot.lane.b32.xlu1 %v540_v20, %s1557_s18 }
 0x156   : > { %v740_v21 = vpop.permute.xlu1 %739 }
 0x157   : > { %1404 = vmatpush3.msk.msra.mxu1 %vm745_vm3, %v740_v21 }
 0x158   : > { %1405 = vmatprep.subr.mxu1 %v1554_v2 }
 0x15a   : > { %v738_v22 = vpop.permute.xlu1 %737 }
 0x15b   : > { %1406 = vmatpush3.msra.mxu1 %v738_v22 }
 0x15c   : > { %1410 = vmatprep.subr.mxu1 %v1554_v2 }
 0x15e   : > { %v821_v38 = vpop.permute.xlu1 %820 }
 0x162   : > { %v819_v40 = vpop.permute.xlu1 %818 }
 0x1ab   : > { %v718_v23 = vpop.f32.mrf.mxu0 }
 0x1ac   : > { %v722_v25 = vmul.f32 0.25, %v718_v23 }
 0x1ad   : > { %v1402_v26 = vpop.f32.mrf.mxu0 }
 0x1ae   : > { %v723_v27 = vadd.f32 %v722_v25, %v637_v24 }
 0x1b0   : > { %v725_v28 = vsel %vm724_vm4, %v723_v27, -inf }
 0x1b1   : > { %726 = vmax.xlane.f32.xlu0 %v725_v28 }
 0x23a   : > { %v727_v29 = vpop.xlane.xlu0 %726 }
 0x23b   : > { %v728_v30 = vsub.f32 %v723_v27, %v727_v29 }
 0x23d   : > { %v729_v31 = vmul.f32 1.442695, %v728_v30 }
 0x23f   : > { %1482 = vpow2.f32 %v729_v31 }
 0x24c   : > { %v1483_v32 = vpop.eup %1482 }
 0x24d   : > { %v731_v33 = vsel %vm724_vm4, %v1483_v32, 0.0 }
 0x24e   : > { %732 = vadd.xlane.f32.xlu0 %v731_v33 }
 0x264   : > { %822 = vrot.lane.b32.xlu0 %v1729_v14, %s1557_s18  ;;  %s437_s18 = sand.u32 1, %s1544_s22  }
 0x265   : > { %s1789_s16 = sshll.u32 %s437_s18, 3  ;;  %s1187_s15 = scalar_lea.sflag [#allocation3], %s437_s18 }
 0x266   : > { %s439_s29 = scalar_lea.vmem [#allocation2], %s1789_s16 }
 0x267   : > { %s1203_s20 = sshll.u32 %s439_s29, 4  ;;  %s1204_s20 = int_to_ptr.vmem [resolvable:$true] %s1203_s20 }
 0x268   : > { %p1499_p0 = scmp.lt.s32.totalorder %s1204_s20, %s1497_s1 }
 0x2d7   : > { %v733_v34 = vpop.xlane.xlu0 %732 }
 0x2d8   : > { %1484 = vrcp.f32 %v733_v34 }
 0x2db   : > { %v823_v37 = vpop.permute.xlu0 %822 }
 0x2e5   : > { %v1485_v35 = vpop.eup %1484 }
 0x2e6   : > { %v735_v36 = vmul.f32 %v1485_v35, %v1483_v32 }
 0x2e8   : > { %1408 = vmatmul.mubr.msk.f32.vlgmr.msra.gmra.mxu1 %vm724_vm4, %v735_v36 }
 0x2e9   : > { %1411 = vmatpush3.xpose.msk.msra.mxu1 %vm642_vm2, %v823_v37  ;;  %1414 = vmatprep.mubr.msk.f32.mxu1 %vm1555_vm1, %v1554_v2 }
 0x2ea   : > { %1412 = vmatprep.subr.mxu1 %v1554_v2 }
 0x2ed   : > { %1413 = vmatpush3.xpose.msk.msra.mxu1 %vm642_vm2, %v821_v38 }
 0x2ee   : > { %1431 = vmatprep.subr.mxu1 %v1554_v2 }
 0x2f0   : > { %1415 = vmatmul.mubr.msk.f32.vlgmr.msra.gmra.mxu1 %vm642_vm2, %v819_v40 }
 0x2f1   : > { %1432 = vmatpush3.msra.mxu1 %v639_v39  ;;  %1435 = vmatprep.mubr.msk.f32.mxu1 %vm1555_vm1, %v1554_v2 }
 0x2f2   : > { %1433 = vmatprep.subr.mxu1 %v1554_v2 }
 0x2f3   : > { %1434 = vmatpush3.msra.mxu1 %v638_v41 }
 0x3a8   : > { %v814_v42 = vpop.f32.mrf.mxu1 }
 0x3a9   : > { %1436 = vmatmul.mubr.msk.f32.vlgmr.msra.gmra.mxu1 %vm642_vm2, %v814_v42 }
 0x3aa   : > { %v1409_v43 = vpop.f32.mrf.mxu1 }
 0x3b0   : > { %v896_v44 = vpop.f32.mrf.mxu1 }
 0x3b1   : > { %v900_v45 = vmul.f32 0.25, %v896_v44 }
 0x3b2   : > { %v1416_v46 = vpop.f32.mrf.mxu1 }
 0x3b3   : > { %v901_v47 = vadd.f32 %v900_v45, %v637_v24 }
 0x3b5   : > { %v902_v48 = vsel %vm724_vm4, %v901_v47, -inf }
 0x3b6   : > { %903 = vmax.xlane.f32.xlu1 %v902_v48 }
 0x3c7   : > { %916 = vrot.lane.b32.xlu1 %v1729_v14, %s1558_s17 }
 0x43f   : > { %v904_v49 = vpop.xlane.xlu1 %903 }
 0x440   : > { %v905_v50 = vsub.f32 %v901_v47, %v904_v49 }
 0x442   : > { %v906_v51 = vmul.f32 1.442695, %v905_v50 }
 0x443   : > { %v917_v52 = vpop.permute.xlu1 %916 }
 0x444   : > { %1486 = vpow2.f32 %v906_v51  ;;  %1418 = vmatpush3.msk.msra.mxu0 %vm745_vm3, %v917_v52 }
 0x445   : > { %1419 = vmatprep.subr.mxu0 %v1554_v2 }
 0x451   : > { %v1487_v53 = vpop.eup %1486 }
 0x452   : > { %v908_v54 = vsel %vm724_vm4, %v1487_v53, 0.0 }
 0x453   : > { %909 = vadd.xlane.f32.xlu0 %v908_v54 }
 0x469   : > { %914 = vrot.lane.b32.xlu0 %v1738_v19, %s1558_s17  ;;  %v1136_v55 = vpop.f32.mrf.mxu1  ;;  %s1492_s17 = scalar_lea.vmem %s1204_s20, 128 }
 0x46a   : > { %p1493_p11 = scmp.ne.s32.totalorder %s1204_s20, %s1492_s17  ;;  %p1500_p1 = scmp.lt.s32.totalorder %s1498_s2, %s1492_s17 }
 0x46b   : > { %v1437_v56 = vpop.f32.mrf.mxu1 }
 0x46c   : > { %p1494_p12 = pnand %p1493_p11, %p1663_p5  ;;  %p1501_p2 = por %p1500_p1, %p1499_p0 }
 0x46e   : > { %p1495_p13 = pneg %p1494_p12 }
 0x470   : > { %p1502_p3 = pnand %p1501_p2, %p1495_p13 }
 0x4dc   : > { %v910_v57 = vpop.xlane.xlu0 %909 }
 0x4dd   : > { %1488 = vrcp.f32 %v910_v57 }
 0x4e0   : > { %v915_v58 = vpop.permute.xlu0 %914 }
 0x4e1   : > { %1420 = vmatpush3.msra.mxu0 %v915_v58 }
 0x4e2   : > { %1424 = vmatprep.subr.mxu0 %v1554_v2 }
 0x4ea   : > { %v1489_v59 = vpop.eup %1488 }
 0x4eb   : > { %v912_v60 = vmul.f32 %v1489_v59, %v1487_v53 }
 0x4ed   : > { %1422 = vmatmul.mubr.msk.f32.vlgmr.msra.gmra.mxu0 %vm724_vm4, %v912_v60  ;;  %v913_v63 = vadd.f32 %v912_v60, %v735_v36 }
 0x4ee   : > { %1425 = vmatpush3.msra.mxu0 %v641_v61  ;;  %1428 = vmatprep.mubr.msk.f32.mxu0 %vm1555_vm1, %v1554_v2 }
 0x4ef   : > { %1426 = vmatprep.subr.mxu0 %v1554_v2  ;;  %v1140_v0 = vmul.f32 0.5, %v913_v63 }
 0x4f0   : > { %1427 = vmatpush3.msra.mxu0 %v640_v62 }
 0x4f1   : > { %1181 = vst.msk [vmem:[%s439_s29] sm:$0xff] %vm724_vm4, %v1140_v0 }
 0x5ad   : > { %v990_v1 = vpop.f32.mrf.mxu0 }
 0x5ae   : > { %1429 = vmatmul.mubr.msk.f32.vlgmr.msra.gmra.mxu0 %vm642_vm2, %v990_v1 }
 0x5af   : > { %v1423_v3 = vpop.f32.mrf.mxu0 }
 0x66e   : > { %v1063_v4 = vpop.f32.mrf.mxu0 }
 0x66f   : > { %v1137_v5 = vadd.f32 %v1136_v55, %v1063_v4 }
 0x670   : > { %v1430_v6 = vpop.f32.mrf.mxu0 }
 0x671   : > { %v1141_v2 = vadd.f32 %v1137_v5, %v1713_v11 }
 0x673   : > { %v1149_v8 = vadd.f32 %v1337_v7, %v1141_v2 }
 0x675   : > { %v1152_v9 = vsel %vm469_vm0, %v1149_v8, 0.0 }
 0x676   : > { %1153 = vadd.xlane.f32.xlu1 %v1152_v9 }
 0x6ff   : > { %v1154_v10 = vpop.xlane.xlu1 %1153 }
 0x700   : > { %v1156_v12 = vmul.f32 0.03125, %v1154_v10 }
 0x702   : > { %v1157_v13 = vsub.f32 %v1149_v8, %v1156_v12 }
 0x704   : > { %v1158_v14 = vmul.f32 %v1157_v13, %v1157_v13 }
 0x706   : > { %v1159_v15 = vsel %vm469_vm0, %v1158_v14, 0.0 }
 0x707   : > { %1160 = vadd.xlane.f32.xlu0 %v1159_v15 }
 0x708   : > { %1505 = shalt.err (!%p1502_p3)
}
 0x709   : > { %s1506_s25 = scalar_lea.hbm %s1201_s28, 128  ;;  %s1510_s19 = scalar_lea.hbm %s1865_s12, 256 }
 0x70a   : > { %p1507_p4 = scmp.ne.s32.totalorder %s1201_s28, %s1506_s25  ;;  %p1511_p9 = scmp.lt.s32.totalorder %s1201_s28, %s1865_s12 }
 0x70b   : > { %p1512_p10 = scmp.lt.s32.totalorder %s1510_s19, %s1506_s25 }
 0x70c   : > { %p1508_p7 = pnand %p1507_p4, %p1663_p5 }
 0x70d   : > { %p1513_p11 = por %p1512_p10, %p1511_p9 }
 0x70e   : > { %p1509_p8 = pneg %p1508_p7 }
 0x710   : > { %p1514_p12 = pnand %p1513_p11, %p1509_p8 }
 0x712   : > { %1517 = shalt.err (!%p1514_p12)
}
 0x713   : > { %1438 = dma.vmem_to_hbm [thread:$0]  (%p1663_p5), %s1204_s20, 128, %s1201_s28, %s1187_s15   ;;  %v1338_v19 = vld [vmem:[%s1862_s9] ss:$0 sm:$0xff] }
 0x714   : > { %v1339_v21 = vld [vmem:[%s1863_s10] ss:$0 sm:$0xff]  ;;  %s456_s13 = scalar_lea.vmem %s1864_s11, %s1698_s26 }
 0x790   : > { %v1161_v11 = vpop.xlane.xlu0 %1160 }
 0x791   : > { %v1162_v16 = vmul.f32 0.03125, %v1161_v11 }
 0x793   : > { %v1163_v17 = vadd.f32 1e-05, %v1162_v16 }
 0x795   : > { %1490 = vrsqrt.f32 %v1163_v17 }
 0x7a2   : > { %v1491_v18 = vpop.eup %1490 }
 0x7a3   : > { %v1165_v20 = vmul.f32 %v1491_v18, %v1157_v13 }
 0x7a5   : > { %v1172_v22 = vmul.f32 %v1338_v19, %v1165_v20 }
 0x7a7   : > { %v1179_v23 = vadd.f32 %v1339_v21, %v1172_v22 }
 0x7a9   : > { %1180 = vst.msk [vmem:[%s456_s13] sm:$0xff] %vm469_vm0, %v1179_v23 }
 0x7aa PF: > { %p1444_p5 = scmp.ge.s32.totalorder %s1552_s24, 2  ;;  %s1222_s20 = sand.u32 1, %s1540_s21  }
 0x7ab   : > { %s1223_s28 = scalar_lea.sflag [#allocation3], %s1222_s20 }
 0x7ac   : > { %p1441_p13 = pnand %p1444_p5, %p1667_p6 }
 0x7ae   : > { %p1442_p0 = pneg %p1441_p13 }
 0x7b0   : > { %1535 = dma.done.wait (%p1442_p0), %s1223_s28, 128  }
 0x7b1   : > { %1537 = vsyncadd (%p1442_p0), %s1223_s28, 4294967168  ;;  %s1875_s15 = sld [smem:[#allocation5_spill]]  ;;  %p23_p1 = scmp.ge.s32.totalorder %s1650_s27, 4  }
 0x7b2   : > { %s1876_s21 = smov %s1544_s22  ;;  %s1877_s22 = smov %s1548_s23 }
 0x7b3   : > { %s1879_s24 = smov %s1650_s27  ;;  %25 = sbr.rel (!%p23_p1) target bundleno = 7 (0x7), region = 117 }
 0x7b7   : > { %s1878_s23 = smov %s1875_s15 }
 0x7b8   :  { %1228 = vsyncpa [#allocation3], 1 }
 0x7b9   :  { %1230 = vsyncpa [#allocation3 + $0x1], 1 }

// kernel: decoder_forward.7
= control target key start
LH: loop header
LB: loop body
LE: loop exit
PB: predicated region body
PF: predicated region fallthrough
CT: control target
= control target key end

     0   :  { %s1650_s0 = inlined_call_operand.vmem [shape: f32[2,8,32], index: 0, kind: input, shape index: {}]   ;;  %s1651_s1 = inlined_call_operand.vmem [shape: f32[2,8,8], index: 1, kind: input, shape index: {}]   ;;  %s1652_s2 = inlined_call_operand.vmem [shape: f32[32,96], index: 2, kind: input, shape index: {}]   ;;  %s1653_s3 = inlined_call_operand.vmem [shape: f32[1,96], index: 3, kind: input, shape index: {}]   ;;  %s1654_s4 = inlined_call_operand.vmem [shape: f32[32,32], index: 4, kind: input, shape index: {}]   ;;  %s1655_s5 = inlined_call_operand.vmem [shape: f32[1,32], index: 5, kind: input, shape index: {}]   ;;  %s1656_s6 = inlined_call_operand.vmem [shape: f32[1,32], index: 6, kind: input, shape index: {}]   ;;  %s1657_s7 = inlined_call_operand.vmem [shape: f32[1,32], index: 7, kind: input, shape index: {}]   ;;  %s1658_s8 = inlined_call_operand.vmem [shape: f32[1,32], index: 8, kind: input, shape index: {}]   ;;  %s1659_s9 = inlined_call_operand.vmem [shape: f32[1,32], index: 9, kind: input, shape index: {}]   ;;  %s1660_s10 = inlined_call_operand.vmem [shape: f32[2,8,32], index: 10, kind: output, shape index: {0}]   ;;  %s1661_s11 = inlined_call_operand.hbm [shape: f32[2,8,8], index: 11, kind: output, shape index: {1}]  }
   0x1   :  { %1662 = sst [smem:[#allocation5_spill]] %s1650_s0 }
   0x2   :  { %1663 = sst [smem:[#allocation6_spill]] %s1651_s1 }
   0x3   :  { %1664 = sst [smem:[#allocation7_spill]] %s1652_s2 }
   0x4   :  { %1665 = sst [smem:[#allocation8_spill]] %s1653_s3 }
   0x5   :  { %17 = vsyncpa [#allocation3], 0 }
   0x6   :  { %19 = vsyncpa [#allocation3 + $0x1], 0  ;;  %s1450_s17 = smov 0   ;;  %s1452_s18 = smov 0  }
   0x7   :  { %s1454_s19 = smov 0   ;;  %s1456_s20 = smov 0  }
   0x8 LB: > { %s1471_s21 = sadd.s32 4294967295, %s1380_s20   ;;  %s1171_s22 = sadd.s32 4294967294, %s1380_s20   ;;  %s1380_s20 = sphi %s1456_s20, %s1675_s20   ;;  %s1376_s19 = sphi %s1454_s19, %s1674_s19   ;;  %s1372_s18 = sphi %s1452_s18, %s1673_s18   ;;  %s1368_s17 = sphi %s1450_s17, %s1672_s17  }
   0x9   : > { %s1475_s23 = sadd.s32 1, %s1380_s20   ;;  %s278_s24 = sadd.s32 1, %s1376_s19 }
   0xa   : > { %s275_s25 = ssub.s32 %s1380_s20, %s1475_s23  ;;  %p288_p0 = scmp.ne.s32.totalorder %s1376_s19, %s1372_s18 }
   0xb   : > { %p276_p1 = scmp.eq.s32.totalorder %s275_s25, 0  ;;  %p289_p2 = scmp.eq.s32.totalorder %s1471_s21, 1 }
   0xc   : > { %p294_p3 = scmp.ne.s32.totalorder %s1372_s18, %s1368_s17  ;;  %p295_p4 = scmp.eq.s32.totalorder %s1171_s22, 1 }
   0xd   : > { %s1486_s26 = scalar_select %p276_p1, %s1376_s19, %s278_s24  }
   0xe   : > { %p1488_p5 = por %p289_p2, %p288_p0  ;;  %p1492_p6 = por %p295_p4, %p294_p3 }
   0xf   : > { %p1174_p7 = scmp.ge.s32.totalorder %s1380_s20, 1  ;;  %p351_p8 = scmp.lt.s32.totalorder %s1380_s20, 3 }
  0x11   : > { %p352_p9 = pnand %p1174_p7, %p351_p8 }
  0x12   : > { %p398_p10 = scmp.lt.s32.totalorder (!%p352_p9), %s1471_s21, 1  ;;  %s1668_s0 = sld [smem:[#allocation5_spill]] (!%p352_p9) }
  0x13   : > { %355 = sbr.rel (%p352_p9) target bundleno = 1864 (0x748), region = 60  ;;  %s1669_s2 = sld [smem:[#allocation7_spill]] (!%p352_p9) }
  0x14   : > { %s1670_s3 = sld [smem:[#allocation8_spill]] (!%p352_p9)  ;;  %s1385_s12 = smov (!%p352_p9), 96  }
  0x15   : > { %s1386_s13 = smov (!%p352_p9), 80   ;;  %s1671_s1 = sld [smem:[#allocation6_spill]] (!%p352_p9) }
  0x16   : > { %s1387_s22 = smov (!%p352_p9), 48   ;;  %s1388_s24 = smov (!%p352_p9), 64  }
  0x17   : > { %s395_s25 = sand.u32 (!%p352_p9), 1, %s1372_s18  }
  0x18   : > { %s399_s29 = scalar_select %p398_p10, %s1471_s21, 1  ;;  %vm413_vm0 = vcmask 261120   ;;  %v1382_v8 = vmov 0.0   ;;  %vm1383_vm1 = vmmov 0   ;;  %v1179_v16 = vld [vmem:[%s1656_s6] ss:$0 sm:$0xff] }
  0x19   : > { %v445_v7 = vld [vmem:[%s1669_s2 + $0x18] sm:$0xff]  ;;  %1217 = vmatprep.subr.mxu0 %v1382_v8  ;;  %v444_v9 = vld [vmem:[%s1669_s2 + $0x10] sm:$0xff]  ;;  %1225 = vmatprep.mubr.msk.f32.mxu0 %vm1383_vm1, %v1382_v8  ;;  %v443_v10 = vld [vmem:[%s1669_s2 + $0x8] sm:$0xff]  ;;  %vm534_vm2 = vcmask 130048   ;;  %vm611_vm3 = vcmask 64512  }
  0x1a   : > { %s1500_s30 = sshll.u32 %s399_s29, 3  ;;  %1218 = vmatpush3.msra.mxu0 %v445_v7  ;;  %1228 = vmatprep.subr.mxu1 %v1382_v8  ;;  %v442_v11 = vld [vmem:[%s1669_s2] sm:$0xff]  ;;  %s1384_s29 = smov 112   ;;  %v528_v57 = vld [vmem:[%s1654_s4 + $0x8] sm:$0xff]  ;;  %v530_v61 = vld [vmem:[%s1654_s4 + $0x18] sm:$0xff] }
  0x1b   : > { %s401_s14 = scalar_lea.vmem %s1668_s0, %s1500_s30  ;;  %1219 = vmatprep.subr.mxu0 %v1382_v8  ;;  %1230 = vmatprep.mubr.msk.f32.mxu1 %vm1383_vm1, %v1382_v8  ;;  %v1180_v18 = vld [vmem:[%s1657_s7] ss:$0 sm:$0xff]  ;;  %s405_s16 = scalar_lea.vmem %s1671_s1, %s1500_s30  ;;  %v529_v62 = vld [vmem:[%s1654_s4 + $0x10] sm:$0xff] }
  0x1c   : > { %v410_v0 = vld [vmem:[%s401_s14] sm:$0xff]  ;;  %1220 = vmatpush3.msra.mxu0 %v444_v9  ;;  %s1389_s1 = smov [#allocation2]  }
  0x1d   : > { %v414_v1 = vsel %vm413_vm0, %v410_v0, 0.0  ;;  %1221 = vmatprep.subr.mxu0 %v1382_v8  ;;  %v1181_v21 = vld [vmem:[%s1670_s3] ss:$0 sm:$0xff]  ;;  %s1324_s2 = sshll.u32 %s1389_s1, 4  ;;  %s1325_s2 = int_to_ptr.vmem [resolvable:$false] %s1324_s2 }
  0x1e   : > { %415 = vadd.xlane.f32.xlu0 %v414_v1  ;;  %1222 = vmatpush3.msra.mxu0 %v443_v10  ;;  %v526_v29 = vld [vmem:[%s405_s16] sm:$0xff]  ;;  %s1060_s16 = scalar_lea.sflag [#allocation3], %s395_s25  ;;  %s1326_s3 = scalar_lea.vmem %s1325_s2, 256 }
  0x1f   : > { %1223 = vmatprep.subr.mxu0 %v1382_v8  ;;  %v527_v60 = vld [vmem:[%s1654_s4] sm:$0xff] }
  0x20   : > { %1224 = vmatpush3.msra.mxu0 %v442_v11 }
  0x21   : > { %1238 = vmatprep.subr.mxu0 %v1382_v8 }
  0xa7   : > { %v416_v2 = vpop.xlane.xlu0 %415 }
  0xa8   : > { %v418_v3 = vmul.f32 0.03125, %v416_v2 }
  0xaa   : > { %v419_v4 = vsub.f32 %v410_v0, %v418_v3 }
  0xac   : > { %v420_v5 = vmul.f32 %v419_v4, %v419_v4 }
  0xae   : > { %v421_v6 = vsel %vm413_vm0, %v420_v5, 0.0 }
  0xaf   : > { %422 = vadd.xlane.f32.xlu0 %v421_v6 }
 0x138   : > { %v423_v12 = vpop.xlane.xlu0 %422 }
 0x139   : > { %v424_v13 = vmul.f32 0.03125, %v423_v12 }
 0x13b   : > { %v425_v14 = vadd.f32 1e-05, %v424_v13 }
 0x13d   : > { %1308 = vrsqrt.f32 %v425_v14 }
 0x14a   : > { %v1309_v15 = vpop.eup %1308 }
 0x14b   : > { %v427_v17 = vmul.f32 %v1309_v15, %v419_v4 }
 0x14d   : > { %v434_v19 = vmul.f32 %v1179_v16, %v427_v17 }
 0x14f   : > { %v1536_v20 = vadd.f32 %v1180_v18, %v434_v19 }
 0x151   : > { %1226 = vmatmul.mubr.msk.f32.vlgmr.msra.gmra.mxu0 %vm413_vm0, %v1536_v20 }
 0x152   : > { %1240 = vmatprep.mubr.msk.f32.mxu0 %vm1383_vm1, %v1382_v8 }
 0x211   : > { %v522_v22 = vpop.f32.mrf.mxu0 }
 0x212   : > { %v523_v23 = vadd.f32 %v1181_v21, %v522_v22 }
 0x213   : > { %v1227_v24 = vpop.f32.mrf.mxu0 }
 0x214   : > { %700 = vrot.lane.b32.xlu0 %v523_v23, %s1384_s29  ;;  %532 = vrot.lane.b32.xlu1 %v523_v23, %s1385_s12 }
 0x218   : > { %702 = vrot.lane.b32.xlu1 %v523_v23, %s1386_s13  ;;  %s1574_s13 = sshll.u32 %s395_s25, 3 }
 0x219   : > { %s397_s14 = scalar_lea.vmem [#allocation2], %s1574_s13 }
 0x286   : > { %v533_v25 = vpop.permute.xlu1 %532  ;;  %v701_v27 = vpop.permute.xlu0 %700 }
 0x287   : > { %1229 = vmatpush3.xpose.msk.msra.mxu1 %vm534_vm2, %v533_v25 }
 0x288   : > { %1233 = vmatprep.subr.mxu1 %v1382_v8 }
 0x28a   : > { %1231 = vmatmul.mubr.msk.f32.vlgmr.msra.gmra.mxu1 %vm534_vm2, %v523_v23  ;;  %v703_v26 = vpop.permute.xlu1 %702 }
 0x28b   : > { %1239 = vmatpush3.xpose.msk.msra.mxu0 %vm534_vm2, %v703_v26  ;;  %1235 = vmatprep.mubr.msk.f32.mxu1 %vm1383_vm1, %v1382_v8 }
 0x28c   : > { %1248 = vmatprep.subr.mxu0 %v1382_v8 }
 0x28e   : > { %1241 = vmatmul.mubr.msk.f32.vlgmr.msra.gmra.mxu0 %vm534_vm2, %v701_v27 }
 0x28f   : > { %1252 = vmatprep.mubr.msk.f32.mxu0 %vm1383_vm1, %v1382_v8  ;;  %1249 = vmatpush3.msra.mxu0 %v530_v61 }
 0x290   : > { %1250 = vmatprep.subr.mxu0 %v1382_v8 }
 0x291   : > { %1251 = vmatpush3.msra.mxu0 %v529_v62 }
 0x34a   : > { %v605_v28 = vpop.f32.mrf.mxu1 }
 0x34b   : > { %v609_v30 = vmul.f32 0.25, %v605_v28 }
 0x34c   : > { %v1232_v31 = vpop.f32.mrf.mxu1 }
 0x34d   : > { %v610_v32 = vadd.f32 %v609_v30, %v526_v29 }
 0x34e   : > { %v774_v33 = vpop.f32.mrf.mxu0 }
 0x34f   : > { %v778_v34 = vmul.f32 0.25, %v774_v33  ;;  %v612_v35 = vsel %vm611_vm3, %v610_v32, -inf }
 0x350   : > { %613 = vmax.xlane.f32.xlu1 %v612_v35  ;;  %v1242_v36 = vpop.f32.mrf.mxu0 }
 0x351   : > { %v779_v37 = vadd.f32 %v778_v34, %v526_v29 }
 0x353   : > { %v780_v38 = vsel %vm611_vm3, %v779_v37, -inf }
 0x354   : > { %781 = vmax.xlane.f32.xlu0 %v780_v38 }
 0x36a   : > { %792 = vrot.lane.b32.xlu0 %v523_v23, %s1387_s22  ;;  %s1195_s22 = sshll.u32 %s1471_s21, 7 }
 0x36b   : > { %s1074_s15 = scalar_lea.hbm %s1661_s11, %s1195_s22 }
 0x3d9   : > { %v614_v39 = vpop.xlane.xlu1 %613 }
 0x3da   : > { %v615_v40 = vsub.f32 %v610_v32, %v614_v39 }
 0x3dc   : > { %v616_v41 = vmul.f32 1.442695, %v615_v40 }
 0x3dd   : > { %v782_v42 = vpop.xlane.xlu0 %781 }
 0x3de   : > { %1310 = vpow2.f32 %v616_v41  ;;  %v783_v43 = vsub.f32 %v779_v37, %v782_v42 }
 0x3e0   : > { %v784_v44 = vmul.f32 1.442695, %v783_v43 }
 0x3e1   : > { %v793_v54 = vpop.permute.xlu0 %792 }
 0x3e2   : > { %1312 = vpow2.f32 %v784_v44 }
 0x3eb   : > { %v1311_v45 = vpop.eup %1310 }
 0x3ec   : > { %v618_v46 = vsel %vm611_vm3, %v1311_v45, 0.0 }
 0x3ed   : > { %619 = vadd.xlane.f32.xlu1 %v618_v46 }
 0x3ef   : > { %v1313_v47 = vpop.eup %1312 }
 0x3f0   : > { %v786_v48 = vsel %vm611_vm3, %v1313_v47, 0.0 }
 0x3f1   : > { %787 = vadd.xlane.f32.xlu1 %v786_v48 }
 0x402   : > { %624 = vrot.lane.b32.xlu1 %v523_v23, %s1388_s24  ;;  %s1076_s24 = sshll.u32 %s397_s14, 4  ;;  %s1077_s24 = int_to_ptr.vmem [resolvable:$true] %s1076_s24 }
 0x403   : > { %s1320_s0 = scalar_lea.vmem %s1077_s24, 128  ;;  %p1327_p0 = scmp.lt.s32.totalorder %s1077_s24, %s1325_s2 }
 0x404   : > { %p1321_p11 = scmp.ne.s32.totalorder %s1077_s24, %s1320_s0  ;;  %p1328_p1 = scmp.lt.s32.totalorder %s1326_s3, %s1320_s0 }
 0x406   : > { %p1322_p12 = pnand %p1321_p11, %p1488_p5  ;;  %p1329_p2 = por %p1328_p1, %p1327_p0 }
 0x408   : > { %p1323_p13 = pneg %p1322_p12 }
 0x40a   : > { %p1330_p3 = pnand %p1329_p2, %p1323_p13 }
 0x476   : > { %v620_v49 = vpop.xlane.xlu1 %619 }
 0x477   : > { %1314 = vrcp.f32 %v620_v49 }
 0x47a   : > { %v788_v50 = vpop.xlane.xlu1 %787 }
 0x47b   : > { %1316 = vrcp.f32 %v788_v50 }
 0x47e   : > { %v625_v51 = vpop.permute.xlu1 %624 }
 0x47f   : > { %1234 = vmatpush3.msra.mxu1 %v625_v51 }
 0x480   : > { %1243 = vmatprep.subr.mxu1 %v1382_v8 }
 0x484   : > { %v1315_v52 = vpop.eup %1314 }
 0x485   : > { %v622_v53 = vmul.f32 %v1315_v52, %v1311_v45 }
 0x487   : > { %1236 = vmatmul.mubr.msk.f32.vlgmr.msra.gmra.mxu1 %vm611_vm3, %v622_v53 }
 0x488   : > { %v1317_v55 = vpop.eup %1316  ;;  %1244 = vmatpush3.msra.mxu1 %v793_v54  ;;  %1245 = vmatprep.mubr.msk.f32.mxu1 %vm1383_vm1, %v1382_v8 }
 0x489   : > { %v790_v56 = vmul.f32 %v1317_v55, %v1313_v47  ;;  %1255 = vmatprep.subr.mxu1 %v1382_v8 }
 0x48b   : > { %1246 = vmatmul.mubr.msk.f32.vlgmr.msra.gmra.mxu1 %vm611_vm3, %v790_v56  ;;  %v791_v58 = vadd.f32 %v790_v56, %v622_v53 }
 0x48c   : > { %1256 = vmatpush3.msra.mxu1 %v528_v57  ;;  %1259 = vmatprep.mubr.msk.f32.mxu1 %vm1383_vm1, %v1382_v8 }
 0x48d   : > { %1257 = vmatprep.subr.mxu1 %v1382_v8  ;;  %v1014_v59 = vmul.f32 0.5, %v791_v58  ;;  %v1191_v8 = vld [vmem:[%s1655_s5] ss:$0 sm:$0xff] }
 0x48e   : > { %1258 = vmatpush3.msra.mxu1 %v527_v60 }
 0x48f   : > { %1054 = vst.msk [vmem:[%s397_s14] sm:$0xff] %vm611_vm3, %v1014_v59 }
 0x547   : > { %v696_v63 = vpop.f32.mrf.mxu1 }
 0x548   : > { %1260 = vmatmul.mubr.msk.f32.vlgmr.msra.gmra.mxu1 %vm534_vm2, %v696_v63 }
 0x549   : > { %v1237_v0 = vpop.f32.mrf.mxu1 }
 0x54b   : > { %v864_v1 = vpop.f32.mrf.mxu1 }
 0x54c   : > { %1253 = vmatmul.mubr.msk.f32.vlgmr.msra.gmra.mxu0 %vm534_vm2, %v864_v1 }
 0x54d   : > { %v1247_v2 = vpop.f32.mrf.mxu1 }
 0x608   : > { %v1010_v3 = vpop.f32.mrf.mxu1 }
 0x60a   : > { %v1261_v4 = vpop.f32.mrf.mxu1 }
 0x60c   : > { %v937_v5 = vpop.f32.mrf.mxu0 }
 0x60d   : > { %v1011_v6 = vadd.f32 %v1010_v3, %v937_v5 }
 0x60e   : > { %v1254_v7 = vpop.f32.mrf.mxu0 }
 0x60f   : > { %v1015_v9 = vadd.f32 %v1011_v6, %v1536_v20 }
 0x611   : > { %v1023_v10 = vadd.f32 %v1191_v8, %v1015_v9 }
 0x613   : > { %v1026_v11 = vsel %vm413_vm0, %v1023_v10, 0.0 }
 0x614   : > { %1027 = vadd.xlane.f32.xlu1 %v1026_v11 }
 0x69d   : > { %v1028_v12 = vpop.xlane.xlu1 %1027 }
 0x69e   : > { %v1029_v13 = vmul.f32 0.03125, %v1028_v12 }
 0x6a0   : > { %v1030_v14 = vsub.f32 %v1023_v10, %v1029_v13 }
 0x6a2   : > { %v1031_v15 = vmul.f32 %v1030_v14, %v1030_v14 }
 0x6a4   : > { %v1032_v16 = vsel %vm413_vm0, %v1031_v15, 0.0 }
 0x6a5   : > { %1033 = vadd.xlane.f32.xlu0 %v1032_v16 }
 0x6a6   : > { %1333 = shalt.err (!%p1330_p3)
}
 0x6a7   : > { %s1334_s21 = scalar_lea.hbm %s1074_s15, 128  ;;  %s1338_s14 = scalar_lea.hbm %s1661_s11, 256 }
 0x6a8   : > { %p1335_p4 = scmp.ne.s32.totalorder %s1074_s15, %s1334_s21  ;;  %p1339_p9 = scmp.lt.s32.totalorder %s1074_s15, %s1661_s11 }
 0x6a9   : > { %p1340_p10 = scmp.lt.s32.totalorder %s1338_s14, %s1334_s21 }
 0x6aa   : > { %p1336_p7 = pnand %p1335_p4, %p1488_p5 }
 0x6ab   : > { %p1341_p11 = por %p1340_p10, %p1339_p9 }
 0x6ac   : > { %p1337_p8 = pneg %p1336_p7 }
 0x6ae   : > { %p1342_p12 = pnand %p1341_p11, %p1337_p8 }
 0x6b0   : > { %1345 = shalt.err (!%p1342_p12)
}
 0x6b1   : > { %1262 = dma.vmem_to_hbm [thread:$0]  (%p1488_p5), %s1077_s24, 128, %s1074_s15, %s1060_s16   ;;  %v1192_v21 = vld [vmem:[%s1658_s8] ss:$0 sm:$0xff] }
 0x6b2   : > { %v1193_v23 = vld [vmem:[%s1659_s9] ss:$0 sm:$0xff]  ;;  %s409_s27 = scalar_lea.vmem %s1660_s10, %s1500_s30 }
 0x72e   : > { %v1034_v17 = vpop.xlane.xlu0 %1033 }
 0x72f   : > { %v1035_v18 = vmul.f32 0.03125, %v1034_v17 }
 0x731   : > { %v1036_v19 = vadd.f32 1e-05, %v1035_v18 }
 0x733   : > { %1318 = vrsqrt.f32 %v1036_v19 }
 0x740   : > { %v1319_v20 = vpop.eup %1318 }
 0x741   : > { %v1038_v22 = vmul.f32 %v1319_v20, %v1030_v14 }
 0x743   : > { %v1045_v24 = vmul.f32 %v1192_v21, %v1038_v22 }
 0x745   : > { %v1052_v25 = vadd.f32 %v1193_v23, %v1045_v24 }
 0x747   : > { %1053 = vst.msk [vmem:[%s409_s27] sm:$0xff] %vm413_vm0, %v1052_v25 }
 0x748 PF: > { %p1268_p5 = scmp.ge.s32.totalorder %s1380_s20, 2  ;;  %s1095_s24 = sand.u32 1, %s1368_s17  }
 0x749   : > { %s1096_s15 = scalar_lea.sflag [#allocation3], %s1095_s24 }
 0x74a   : > { %p1265_p13 = pnand %p1268_p5, %p1492_p6 }
 0x74c   : > { %p1266_p0 = pneg %p1265_p13 }
 0x74e   : > { %1363 = dma.done.wait (%p1266_p0), %s1096_s15, 128  }
 0x74f   : > { %1365 = vsyncadd (%p1266_p0), %s1096_s15, 4294967168  ;;  %p22_p1 = scmp.ge.s32.totalorder %s1475_s23, 4   ;;  %s1672_s17 = smov %s1372_s18 }
 0x750   : > { %s1673_s18 = smov %s1376_s19  ;;  %s1674_s19 = smov %s1486_s26 }
 0x751   : > { %s1675_s20 = smov %s1475_s23  ;;  %24 = sbr.rel (!%p22_p1) target bundleno = 8 (0x8), region = 110 }
 0x756   :  { %1101 = vsyncpa [#allocation3], 1 }
 0x757   :  { %1103 = vsyncpa [#allocation3 + $0x1], 1 }

</bundles_post_ra>
